<compile_context>
chip_gen: v7x
topology: tpu7x:2x2x1
jax: 0.10.0
libtpu: 0.0.40
codegen_flags: <defaults>
</compile_context>

<pallas_src>
import jax
import jax.numpy as jnp
from jax import lax
from jax.experimental import pallas as pl
from jax.experimental.pallas import tpu as pltpu


def _silu(x):
    return x / (1.0 + jnp.exp(-x))


def _softplus(x):
    return jnp.maximum(x, 0.0) + jnp.log1p(jnp.exp(-jnp.abs(x)))


def _make_kernel(S, M, H, R, N, K, CH, eps):
    n_chunks = S // CH

    def kernel(x_ref,
               w_in_h_ref, b_in_h_ref, w_in_r_ref, b_in_r_ref,
               conv_w_ref, conv_b_ref,
               w_xr_ref, b_xr_ref, w_xb_ref, b_xb_ref, w_xc_ref, b_xc_ref,
               w_dt_ref, b_dt_ref, w_out_ref, b_out_ref,
               a_t_ref, d_ref, norm_w_ref,
               out_ref,
               dlt_s, du_s, b_s, c_s):
        x_in = x_ref[0]                                                # (S, M)

        # ---- linear_in, split into conv branch / gate branch (lane-aligned) ----
        h = jnp.dot(x_in, w_in_h_ref[...],
                    preferred_element_type=jnp.float32) + b_in_h_ref[...]      # (S, H)
        res = jnp.dot(x_in, w_in_r_ref[...],
                      preferred_element_type=jnp.float32) + b_in_r_ref[...]    # (S, H)

        # ---- causal depthwise conv1d via XLU roll + iota mask (no pad/concat) ----
        cw = conv_w_ref[...]                                           # (K, H)
        row = lax.broadcasted_iota(jnp.int32, (S, H), 0)
        acc = h * cw[K - 1:K, :]                                       # shift-0 tap
        for k in range(K - 1):                                         # K static -> unrolled
            j = K - 1 - k                                              # causal shift
            shifted = pltpu.roll(h, shift=j, axis=0)
            shifted = jnp.where(row >= j, shifted, 0.0)
            acc = acc + shifted * cw[k:k + 1, :]
        u = _silu(acc + conv_b_ref[...])                               # (S, H)

        # ---- input-dependent SSM parameters (split matmuls, lane-dense outputs) ----
        dlt_lr = jnp.dot(u, w_xr_ref[...],
                         preferred_element_type=jnp.float32) + b_xr_ref[...]   # (S, R)
        delta = _softplus(
            jnp.dot(dlt_lr, w_dt_ref[...],
                    preferred_element_type=jnp.float32) + b_dt_ref[...])       # (S, H)
        b_s[...] = jnp.dot(u, w_xb_ref[...],
                           preferred_element_type=jnp.float32) + b_xb_ref[...]  # (S, N)
        c_s[...] = jnp.dot(u, w_xc_ref[...],
                           preferred_element_type=jnp.float32) + b_xc_ref[...]  # (S, N)
        dlt_s[...] = delta
        du_s[...] = delta * u

        a_t = a_t_ref[...]                                             # (N, H)

        # ---- chunked selective scan: state is (N, H), CH timesteps per chunk ----
        def chunk_body(c, st):
            off = pl.multiple_of(c * CH, CH)
            d_c = dlt_s[pl.ds(off, CH), :]                             # (CH, H)
            du_c = du_s[pl.ds(off, CH), :]                             # (CH, H)
            b_c = b_s[pl.ds(off, CH), :]                               # (CH, N)
            c_c = c_s[pl.ds(off, CH), :]                               # (CH, N)

            # Hoisted off the serial recurrence: EUP exp, outer products, transposes.
            dA = [jnp.exp(d_c[i:i + 1, :] * a_t) for i in range(CH)]              # (N, H)
            dBu = [jnp.transpose(b_c[i:i + 1, :]) * du_c[i:i + 1, :]              # (N, H)
                   for i in range(CH)]
            ct_cols = [jnp.transpose(c_c[i:i + 1, :]) for i in range(CH)]         # (N, 1)

            y_rows = []
            for i in range(CH):                                        # unrolled
                st = dA[i] * st + dBu[i]                               # pure VPU FMA chain
                # C contraction: VPU multiply + sublane reduce (no MXU on the scan path)
                y_rows.append(jnp.sum(ct_cols[i] * st, axis=0, keepdims=True))
            # Reuse dlt_s rows (already consumed) to hold ys -> one aligned (CH,H) store.
            dlt_s[pl.ds(off, CH), :] = jnp.concatenate(y_rows, axis=0)
            return st

        lax.fori_loop(0, n_chunks, chunk_body, jnp.zeros((N, H), jnp.float32))

        # ---- skip term, gate, linear_out, RMSNorm, residual ----
        y = dlt_s[...] + u * d_ref[...]                                # (S, H)
        y = y * _silu(res)
        out_l = jnp.dot(y, w_out_ref[...],
                        preferred_element_type=jnp.float32) + b_out_ref[...]    # (S, M)
        ms = jnp.mean(out_l * out_l, axis=-1, keepdims=True)
        out_ref[0] = x_in + out_l * lax.rsqrt(ms + eps) * norm_w_ref[...]

    return kernel


def mamba_block_forward(x, params, *, chunk=8):
    Bsz, S, M = x.shape
    K, H = params["conv_w"].shape
    R = params["w_dt"].shape[0]
    N = params["w_xb"].shape[1]
    eps = 1e-15

    CH = chunk
    while S % CH:            # fall back to a chunk size that divides S
        CH //= 2

    kernel = _make_kernel(S, M, H, R, N, K, CH, eps)

    def wspec(shape):
        return pl.BlockSpec(shape, lambda b: (0, 0))

    in_specs = [
        pl.BlockSpec((1, S, M), lambda b: (b, 0, 0)),   # x
        wspec((M, H)), wspec((1, H)),                   # linear_in -> conv branch
        wspec((M, H)), wspec((1, H)),                   # linear_in -> gate branch
        wspec((K, H)), wspec((1, H)),                   # depthwise conv
        wspec((H, R)), wspec((1, R)),                   # linear_x -> delta (low rank)
        wspec((H, N)), wspec((1, N)),                   # linear_x -> B
        wspec((H, N)), wspec((1, N)),                   # linear_x -> C
        wspec((R, H)), wspec((1, H)),                   # linear_dt
        wspec((H, M)), wspec((1, M)),                   # linear_out
        wspec((N, H)),                                  # A (transposed: state, hidden)
        wspec((1, H)),                                  # D
        wspec((1, M)),                                  # RMSNorm weight
    ]

    weight_elems = sum(int(v.size) for v in params.values())
    flops = Bsz * (2 * S * M * H * 2            # linear_in (both halves)
                   + 2 * S * H * (R + 2 * N)    # linear_x (delta/B/C)
                   + 2 * S * R * H              # linear_dt
                   + 2 * S * H * M              # linear_out
                   + 2 * S * H * K              # depthwise conv
                   + 6 * S * N * H)             # selective scan
    transcendentals = Bsz * S * (N * H + 4 * H)
    bytes_accessed = 4 * (2 * Bsz * S * M + Bsz * weight_elems)

    return pl.pallas_call(
        kernel,
        out_shape=jax.ShapeDtypeStruct((Bsz, S, M), jnp.float32),
        grid_spec=pltpu.PrefetchScalarGridSpec(
            num_scalar_prefetch=0,
            grid=(Bsz,),
            in_specs=in_specs,
            out_specs=pl.BlockSpec((1, S, M), lambda b: (b, 0, 0)),
            scratch_shapes=[
                pltpu.VMEM((S, H), jnp.float32),   # delta (reused for ys)
                pltpu.VMEM((S, H), jnp.float32),   # delta * u
                pltpu.VMEM((S, N), jnp.float32),   # B
                pltpu.VMEM((S, N), jnp.float32),   # C
            ],
        ),
        compiler_params=pltpu.CompilerParams(
            dimension_semantics=("parallel",),          # batch iterations independent (v7x 2 TCs)
            vmem_limit_bytes=32 * 1024 * 1024),
        cost_estimate=pl.CostEstimate(
            flops=int(flops),
            transcendentals=int(transcendentals),
            bytes_accessed=int(bytes_accessed)),
    )(x, params["w_in_h"], params["b_in_h"], params["w_in_r"], params["b_in_r"],
      params["conv_w"], params["conv_b"],
      params["w_xr"], params["b_xr"], params["w_xb"], params["b_xb"],
      params["w_xc"], params["b_xc"],
      params["w_dt"], params["b_dt"], params["w_out"], params["b_out"],
      params["a_t"], params["d"], params["norm_w"])


def init_params(key, M, H, R, N, K):
    keys = jax.random.split(key, 16)

    def dense(k, fin, fout):
        return jax.random.normal(k, (fin, fout), jnp.float32) * (1.0 / jnp.sqrt(fin))

    def bias(k, fout):
        return jax.random.normal(k, (1, fout), jnp.float32) * 0.02

    p = {}
    p["w_in_h"], p["b_in_h"] = dense(keys[0], M, H), bias(keys[1], H)
    p["w_in_r"], p["b_in_r"] = dense(keys[2], M, H), bias(keys[3], H)
    p["conv_w"] = jax.random.normal(keys[4], (K, H), jnp.float32) * 0.3
    p["conv_b"] = bias(keys[5], H)
    p["w_xr"], p["b_xr"] = dense(keys[6], H, R), bias(keys[7], R)
    p["w_xb"], p["b_xb"] = dense(keys[8], H, N), bias(keys[9], N)
    p["w_xc"], p["b_xc"] = dense(keys[10], H, N), bias(keys[11], N)
    p["w_dt"], p["b_dt"] = dense(keys[12], R, H), bias(keys[13], H)
    p["w_out"], p["b_out"] = dense(keys[14], H, M), bias(keys[15], M)
    # A = -exp(log(arange(1..N) + 1e-15)) repeated over hidden; stored transposed (N, H).
    a_row = -jnp.exp(jnp.log(jnp.arange(1, N + 1, dtype=jnp.float32) + 1e-15))
    p["a_t"] = jnp.tile(a_row[:, None], (1, H))
    p["d"] = jnp.ones((1, H), jnp.float32)        # D init = ones
    p["norm_w"] = jnp.ones((1, M), jnp.float32)   # RMSNorm weight init = ones
    return p


def reference_forward(x, p, H, R, N, K, eps=1e-15):
    """Pure-JAX mirror of the PyTorch MambaBlock forward (for validation)."""
    Bsz, S, M = x.shape
    h = x @ p["w_in_h"] + p["b_in_h"][0]
    res = x @ p["w_in_r"] + p["b_in_r"][0]
    hp = jnp.pad(h, ((0, 0), (K - 1, 0), (0, 0)))
    acc = jnp.zeros_like(h)
    for k in range(K):
        acc = acc + hp[:, k:k + S, :] * p["conv_w"][k][None, None, :]
    u = _silu(acc + p["conv_b"][0])
    dlt_lr = u @ p["w_xr"] + p["b_xr"][0]
    delta = _softplus(dlt_lr @ p["w_dt"] + p["b_dt"][0])
    Bm = u @ p["w_xb"] + p["b_xb"][0]
    Cm = u @ p["w_xc"] + p["b_xc"][0]
    A = jnp.transpose(p["a_t"])                        # (H, N)
    dA = jnp.exp(delta[..., None] * A[None, None])
    dBu = delta[..., None] * Bm[:, :, None, :] * u[..., None]
    st = jnp.zeros((Bsz, H, N), jnp.float32)
    ys = []
    for i in range(S):
        st = dA[:, i] * st + dBu[:, i]
        ys.append(jnp.sum(st * Cm[:, i][:, None, :], axis=-1))
    y = jnp.stack(ys, axis=1) + u * p["d"][0]
    y = y * _silu(res)
    out_l = y @ p["w_out"] + p["b_out"][0]
    normed = out_l * lax.rsqrt(jnp.mean(out_l * out_l, -1, keepdims=True) + eps) * p["norm_w"][0]
    return x + normed


if __name__ == "__main__":
    model_size, hidden_size, rank, state_size, kernel_size = 32, 16, 4, 8, 4
    batch, seq = 2, 8

    key = jax.random.PRNGKey(0)
    kx, kp = jax.random.split(key)
    x = jax.random.normal(kx, (batch, seq, model_size), jnp.float32)
    params = init_params(kp, model_size, hidden_size, rank, state_size, kernel_size)

    out = jax.block_until_ready(mamba_block_forward(x, params))
    ref = jax.block_until_ready(
        reference_forward(x, params, hidden_size, rank, state_size, kernel_size))

    assert out.shape == x.shape and out.dtype == jnp.float32
    max_err = float(jnp.max(jnp.abs(out - ref)))
    if max_err > 2e-3:
        raise AssertionError(f"kernel/reference mismatch: max_err={max_err}")
    print("KERNEL_OK")
</pallas_src>

<mosaic_0001>
module attributes {stable_mosaic.version = 11 : i64} {
  func.func @kernel(%arg0: i32, %arg1: memref<1x8x32xf32, #tpu.memory_space<vmem>>, %arg2: memref<32x16xf32, #tpu.memory_space<vmem>>, %arg3: memref<1x16xf32, #tpu.memory_space<vmem>>, %arg4: memref<32x16xf32, #tpu.memory_space<vmem>>, %arg5: memref<1x16xf32, #tpu.memory_space<vmem>>, %arg6: memref<4x16xf32, #tpu.memory_space<vmem>>, %arg7: memref<1x16xf32, #tpu.memory_space<vmem>>, %arg8: memref<16x4xf32, #tpu.memory_space<vmem>>, %arg9: memref<1x4xf32, #tpu.memory_space<vmem>>, %arg10: memref<16x8xf32, #tpu.memory_space<vmem>>, %arg11: memref<1x8xf32, #tpu.memory_space<vmem>>, %arg12: memref<16x8xf32, #tpu.memory_space<vmem>>, %arg13: memref<1x8xf32, #tpu.memory_space<vmem>>, %arg14: memref<4x16xf32, #tpu.memory_space<vmem>>, %arg15: memref<1x16xf32, #tpu.memory_space<vmem>>, %arg16: memref<16x32xf32, #tpu.memory_space<vmem>>, %arg17: memref<1x32xf32, #tpu.memory_space<vmem>>, %arg18: memref<8x16xf32, #tpu.memory_space<vmem>>, %arg19: memref<1x16xf32, #tpu.memory_space<vmem>>, %arg20: memref<1x32xf32, #tpu.memory_space<vmem>>, %arg21: memref<1x8x32xf32, #tpu.memory_space<vmem>>, %arg22: memref<8x16xf32, #tpu.memory_space<vmem>>, %arg23: memref<8x16xf32, #tpu.memory_space<vmem>>, %arg24: memref<8x8xf32, #tpu.memory_space<vmem>>, %arg25: memref<8x8xf32, #tpu.memory_space<vmem>>) attributes {dimension_semantics = [#tpu.dimension_semantics<parallel>], iteration_bounds = array<i64: 2>, scalar_prefetch = 0 : i64, scratch_operands = 4 : i64, tpu.core_type = #tpu.core_type<tc>, window_params = [{transform_indices = @transform_0, window_bounds = array<i64: 1, 8, 32>}, {pipeline_mode = #tpu.pipeline_mode<synchronous>, transform_indices = @transform_1, window_bounds = array<i64: 32, 16>}, {pipeline_mode = #tpu.pipeline_mode<synchronous>, transform_indices = @transform_2, window_bounds = array<i64: 1, 16>}, {pipeline_mode = #tpu.pipeline_mode<synchronous>, transform_indices = @transform_3, window_bounds = array<i64: 32, 16>}, {pipeline_mode = #tpu.pipeline_mode<synchronous>, transform_indices = @transform_4, window_bounds = array<i64: 1, 16>}, {pipeline_mode = #tpu.pipeline_mode<synchronous>, transform_indices = @transform_5, window_bounds = array<i64: 4, 16>}, {pipeline_mode = #tpu.pipeline_mode<synchronous>, transform_indices = @transform_6, window_bounds = array<i64: 1, 16>}, {pipeline_mode = #tpu.pipeline_mode<synchronous>, transform_indices = @transform_7, window_bounds = array<i64: 16, 4>}, {pipeline_mode = #tpu.pipeline_mode<synchronous>, transform_indices = @transform_8, window_bounds = array<i64: 1, 4>}, {pipeline_mode = #tpu.pipeline_mode<synchronous>, transform_indices = @transform_9, window_bounds = array<i64: 16, 8>}, {pipeline_mode = #tpu.pipeline_mode<synchronous>, transform_indices = @transform_10, window_bounds = array<i64: 1, 8>}, {pipeline_mode = #tpu.pipeline_mode<synchronous>, transform_indices = @transform_11, window_bounds = array<i64: 16, 8>}, {pipeline_mode = #tpu.pipeline_mode<synchronous>, transform_indices = @transform_12, window_bounds = array<i64: 1, 8>}, {pipeline_mode = #tpu.pipeline_mode<synchronous>, transform_indices = @transform_13, window_bounds = array<i64: 4, 16>}, {pipeline_mode = #tpu.pipeline_mode<synchronous>, transform_indices = @transform_14, window_bounds = array<i64: 1, 16>}, {pipeline_mode = #tpu.pipeline_mode<synchronous>, transform_indices = @transform_15, window_bounds = array<i64: 16, 32>}, {pipeline_mode = #tpu.pipeline_mode<synchronous>, transform_indices = @transform_16, window_bounds = array<i64: 1, 32>}, {pipeline_mode = #tpu.pipeline_mode<synchronous>, transform_indices = @transform_17, window_bounds = array<i64: 8, 16>}, {pipeline_mode = #tpu.pipeline_mode<synchronous>, transform_indices = @transform_18, window_bounds = array<i64: 1, 16>}, {pipeline_mode = #tpu.pipeline_mode<synchronous>, transform_indices = @transform_19, window_bounds = array<i64: 1, 32>}, {transform_indices = @transform_20, window_bounds = array<i64: 1, 8, 32>}]} {
    %c0 = arith.constant 0 : index
    %c0_0 = arith.constant 0 : index
    %c0_1 = arith.constant 0 : index
    %0 = vector.load %arg1[%c0, %c0_0, %c0_1] : memref<1x8x32xf32, #tpu.memory_space<vmem>>, vector<1x8x32xf32>
    %1 = vector.shape_cast %0 : vector<1x8x32xf32> to vector<8x32xf32>
    %c0_2 = arith.constant 0 : index
    %c0_3 = arith.constant 0 : index
    %2 = vector.load %arg2[%c0_2, %c0_3] : memref<32x16xf32, #tpu.memory_space<vmem>>, vector<32x16xf32>
    %cst = arith.constant dense<0.000000e+00> : vector<8x16xf32>
    %3 = tpu.matmul %1, %2, %cst {dimension_numbers = #tpu.dot_dimension_numbers<[1], [0], [0], [1], [0, 0, 1, 1], [], []>} : vector<8x32xf32>, vector<32x16xf32>, vector<8x16xf32> -> vector<8x16xf32>
    %c0_4 = arith.constant 0 : index
    %c0_5 = arith.constant 0 : index
    %4 = vector.load %arg3[%c0_4, %c0_5] : memref<1x16xf32, #tpu.memory_space<vmem>>, vector<1x16xf32>
    %5 = vector.broadcast %4 : vector<1x16xf32> to vector<8x16xf32>
    %6 = arith.addf %3, %5 : vector<8x16xf32>
    %c0_6 = arith.constant 0 : index
    %c0_7 = arith.constant 0 : index
    %7 = vector.load %arg4[%c0_6, %c0_7] : memref<32x16xf32, #tpu.memory_space<vmem>>, vector<32x16xf32>
    %cst_8 = arith.constant dense<0.000000e+00> : vector<8x16xf32>
    %8 = tpu.matmul %1, %7, %cst_8 {dimension_numbers = #tpu.dot_dimension_numbers<[1], [0], [0], [1], [0, 0, 1, 1], [], []>} : vector<8x32xf32>, vector<32x16xf32>, vector<8x16xf32> -> vector<8x16xf32>
    %c0_9 = arith.constant 0 : index
    %c0_10 = arith.constant 0 : index
    %9 = vector.load %arg5[%c0_9, %c0_10] : memref<1x16xf32, #tpu.memory_space<vmem>>, vector<1x16xf32>
    %10 = vector.broadcast %9 : vector<1x16xf32> to vector<8x16xf32>
    %11 = arith.addf %8, %10 : vector<8x16xf32>
    %c0_11 = arith.constant 0 : index
    %c0_12 = arith.constant 0 : index
    %12 = vector.load %arg6[%c0_11, %c0_12] : memref<4x16xf32, #tpu.memory_space<vmem>>, vector<4x16xf32>
    %13 = tpu.iota {dimensions = array<i32: 0>} : vector<8x16xi32>
    %14 = vector.extract_strided_slice %12 {offsets = [3, 0], sizes = [1, 16], strides = [1, 1]} : vector<4x16xf32> to vector<1x16xf32>
    %15 = vector.broadcast %14 : vector<1x16xf32> to vector<8x16xf32>
    %16 = arith.mulf %6, %15 : vector<8x16xf32>
    %c3_i32 = arith.constant 3 : i32
    %17 = tpu.dynamic_rotate %6 by %c3_i32 dim 0 : vector<8x16xf32>, i32 -> vector<8x16xf32>
    %c3_i32_13 = arith.constant 3 : i32
    %18 = vector.broadcast %c3_i32_13 : i32 to vector<8x16xi32>
    %19 = arith.cmpi sge, %13, %18 : vector<8x16xi32>
    %cst_14 = arith.constant 0.000000e+00 : f32
    %20 = vector.broadcast %cst_14 : f32 to vector<8x16xf32>
    %21 = arith.select %19, %17, %20 : vector<8x16xi1>, vector<8x16xf32>
    %22 = vector.extract_strided_slice %12 {offsets = [0, 0], sizes = [1, 16], strides = [1, 1]} : vector<4x16xf32> to vector<1x16xf32>
    %23 = vector.broadcast %22 : vector<1x16xf32> to vector<8x16xf32>
    %24 = arith.mulf %21, %23 : vector<8x16xf32>
    %25 = arith.addf %16, %24 : vector<8x16xf32>
    %c2_i32 = arith.constant 2 : i32
    %26 = tpu.dynamic_rotate %6 by %c2_i32 dim 0 : vector<8x16xf32>, i32 -> vector<8x16xf32>
    %c2_i32_15 = arith.constant 2 : i32
    %27 = vector.broadcast %c2_i32_15 : i32 to vector<8x16xi32>
    %28 = arith.cmpi sge, %13, %27 : vector<8x16xi32>
    %cst_16 = arith.constant 0.000000e+00 : f32
    %29 = vector.broadcast %cst_16 : f32 to vector<8x16xf32>
    %30 = arith.select %28, %26, %29 : vector<8x16xi1>, vector<8x16xf32>
    %31 = vector.extract_strided_slice %12 {offsets = [1, 0], sizes = [1, 16], strides = [1, 1]} : vector<4x16xf32> to vector<1x16xf32>
    %32 = vector.broadcast %31 : vector<1x16xf32> to vector<8x16xf32>
    %33 = arith.mulf %30, %32 : vector<8x16xf32>
    %34 = arith.addf %25, %33 : vector<8x16xf32>
    %c1_i32 = arith.constant 1 : i32
    %35 = tpu.dynamic_rotate %6 by %c1_i32 dim 0 : vector<8x16xf32>, i32 -> vector<8x16xf32>
    %c1_i32_17 = arith.constant 1 : i32
    %36 = vector.broadcast %c1_i32_17 : i32 to vector<8x16xi32>
    %37 = arith.cmpi sge, %13, %36 : vector<8x16xi32>
    %cst_18 = arith.constant 0.000000e+00 : f32
    %38 = vector.broadcast %cst_18 : f32 to vector<8x16xf32>
    %39 = arith.select %37, %35, %38 : vector<8x16xi1>, vector<8x16xf32>
    %40 = vector.extract_strided_slice %12 {offsets = [2, 0], sizes = [1, 16], strides = [1, 1]} : vector<4x16xf32> to vector<1x16xf32>
    %41 = vector.broadcast %40 : vector<1x16xf32> to vector<8x16xf32>
    %42 = arith.mulf %39, %41 : vector<8x16xf32>
    %43 = arith.addf %34, %42 : vector<8x16xf32>
    %c0_19 = arith.constant 0 : index
    %c0_20 = arith.constant 0 : index
    %44 = vector.load %arg7[%c0_19, %c0_20] : memref<1x16xf32, #tpu.memory_space<vmem>>, vector<1x16xf32>
    %45 = vector.broadcast %44 : vector<1x16xf32> to vector<8x16xf32>
    %46 = arith.addf %43, %45 : vector<8x16xf32>
    %cst_21 = arith.constant 0.000000e+00 : f32
    %47 = vector.broadcast %cst_21 : f32 to vector<8x16xf32>
    %48 = arith.subf %47, %46 : vector<8x16xf32>
    %49 = math.exp %48 : vector<8x16xf32>
    %cst_22 = arith.constant 1.000000e+00 : f32
    %50 = vector.broadcast %cst_22 : f32 to vector<8x16xf32>
    %51 = arith.addf %50, %49 : vector<8x16xf32>
    %52 = arith.divf %46, %51 : vector<8x16xf32>
    %c0_23 = arith.constant 0 : index
    %c0_24 = arith.constant 0 : index
    %53 = vector.load %arg8[%c0_23, %c0_24] : memref<16x4xf32, #tpu.memory_space<vmem>>, vector<16x4xf32>
    %cst_25 = arith.constant dense<0.000000e+00> : vector<8x4xf32>
    %54 = tpu.matmul %52, %53, %cst_25 {dimension_numbers = #tpu.dot_dimension_numbers<[1], [0], [0], [1], [0, 0, 1, 1], [], []>} : vector<8x16xf32>, vector<16x4xf32>, vector<8x4xf32> -> vector<8x4xf32>
    %c0_26 = arith.constant 0 : index
    %c0_27 = arith.constant 0 : index
    %55 = vector.load %arg9[%c0_26, %c0_27] : memref<1x4xf32, #tpu.memory_space<vmem>>, vector<1x4xf32>
    %56 = vector.broadcast %55 : vector<1x4xf32> to vector<8x4xf32>
    %57 = arith.addf %54, %56 : vector<8x4xf32>
    %c0_28 = arith.constant 0 : index
    %c0_29 = arith.constant 0 : index
    %58 = vector.load %arg14[%c0_28, %c0_29] : memref<4x16xf32, #tpu.memory_space<vmem>>, vector<4x16xf32>
    %cst_30 = arith.constant dense<0.000000e+00> : vector<8x16xf32>
    %59 = tpu.matmul %57, %58, %cst_30 {dimension_numbers = #tpu.dot_dimension_numbers<[1], [0], [0], [1], [0, 0, 1, 1], [], []>} : vector<8x4xf32>, vector<4x16xf32>, vector<8x16xf32> -> vector<8x16xf32>
    %c0_31 = arith.constant 0 : index
    %c0_32 = arith.constant 0 : index
    %60 = vector.load %arg15[%c0_31, %c0_32] : memref<1x16xf32, #tpu.memory_space<vmem>>, vector<1x16xf32>
    %61 = vector.broadcast %60 : vector<1x16xf32> to vector<8x16xf32>
    %62 = arith.addf %59, %61 : vector<8x16xf32>
    %cst_33 = arith.constant 0.000000e+00 : f32
    %63 = vector.broadcast %cst_33 : f32 to vector<8x16xf32>
    %64 = arith.maximumf %62, %63 : vector<8x16xf32>
    %65 = math.absf %62 : vector<8x16xf32>
    %cst_34 = arith.constant 0.000000e+00 : f32
    %66 = vector.broadcast %cst_34 : f32 to vector<8x16xf32>
    %67 = arith.subf %66, %65 : vector<8x16xf32>
    %68 = math.exp %67 : vector<8x16xf32>
    %69 = math.log1p %68 : vector<8x16xf32>
    %70 = arith.addf %64, %69 : vector<8x16xf32>
    %c0_35 = arith.constant 0 : index
    %c0_36 = arith.constant 0 : index
    %71 = vector.load %arg10[%c0_35, %c0_36] : memref<16x8xf32, #tpu.memory_space<vmem>>, vector<16x8xf32>
    %cst_37 = arith.constant dense<0.000000e+00> : vector<8x8xf32>
    %72 = tpu.matmul %52, %71, %cst_37 {dimension_numbers = #tpu.dot_dimension_numbers<[1], [0], [0], [1], [0, 0, 1, 1], [], []>} : vector<8x16xf32>, vector<16x8xf32>, vector<8x8xf32> -> vector<8x8xf32>
    %c0_38 = arith.constant 0 : index
    %c0_39 = arith.constant 0 : index
    %73 = vector.load %arg11[%c0_38, %c0_39] : memref<1x8xf32, #tpu.memory_space<vmem>>, vector<1x8xf32>
    %74 = vector.broadcast %73 : vector<1x8xf32> to vector<8x8xf32>
    %75 = arith.addf %72, %74 : vector<8x8xf32>
    %c0_40 = arith.constant 0 : index
    %c0_41 = arith.constant 0 : index
    %76 = vector.load %arg24[%c0_40, %c0_41] : memref<8x8xf32, #tpu.memory_space<vmem>>, vector<8x8xf32>
    tpu.vector_store %arg24[%c0_40, %c0_41], %75 {strides = array<i32>} : memref<8x8xf32, #tpu.memory_space<vmem>>, vector<8x8xf32>,
    %c0_42 = arith.constant 0 : index
    %c0_43 = arith.constant 0 : index
    %77 = vector.load %arg12[%c0_42, %c0_43] : memref<16x8xf32, #tpu.memory_space<vmem>>, vector<16x8xf32>
    %cst_44 = arith.constant dense<0.000000e+00> : vector<8x8xf32>
    %78 = tpu.matmul %52, %77, %cst_44 {dimension_numbers = #tpu.dot_dimension_numbers<[1], [0], [0], [1], [0, 0, 1, 1], [], []>} : vector<8x16xf32>, vector<16x8xf32>, vector<8x8xf32> -> vector<8x8xf32>
    %c0_45 = arith.constant 0 : index
    %c0_46 = arith.constant 0 : index
    %79 = vector.load %arg13[%c0_45, %c0_46] : memref<1x8xf32, #tpu.memory_space<vmem>>, vector<1x8xf32>
    %80 = vector.broadcast %79 : vector<1x8xf32> to vector<8x8xf32>
    %81 = arith.addf %78, %80 : vector<8x8xf32>
    %c0_47 = arith.constant 0 : index
    %c0_48 = arith.constant 0 : index
    %82 = vector.load %arg25[%c0_47, %c0_48] : memref<8x8xf32, #tpu.memory_space<vmem>>, vector<8x8xf32>
    tpu.vector_store %arg25[%c0_47, %c0_48], %81 {strides = array<i32>} : memref<8x8xf32, #tpu.memory_space<vmem>>, vector<8x8xf32>,
    %c0_49 = arith.constant 0 : index
    %c0_50 = arith.constant 0 : index
    %83 = vector.load %arg22[%c0_49, %c0_50] : memref<8x16xf32, #tpu.memory_space<vmem>>, vector<8x16xf32>
    tpu.vector_store %arg22[%c0_49, %c0_50], %70 {strides = array<i32>} : memref<8x16xf32, #tpu.memory_space<vmem>>, vector<8x16xf32>,
    %84 = arith.mulf %70, %52 : vector<8x16xf32>
    %c0_51 = arith.constant 0 : index
    %c0_52 = arith.constant 0 : index
    %85 = vector.load %arg23[%c0_51, %c0_52] : memref<8x16xf32, #tpu.memory_space<vmem>>, vector<8x16xf32>
    tpu.vector_store %arg23[%c0_51, %c0_52], %84 {strides = array<i32>} : memref<8x16xf32, #tpu.memory_space<vmem>>, vector<8x16xf32>,
    %c0_53 = arith.constant 0 : index
    %c0_54 = arith.constant 0 : index
    %86 = vector.load %arg18[%c0_53, %c0_54] : memref<8x16xf32, #tpu.memory_space<vmem>>, vector<8x16xf32>
    %cst_55 = arith.constant 0.000000e+00 : f32
    %87 = vector.broadcast %cst_55 : f32 to vector<8x16xf32>
    %c0_i32 = arith.constant 0 : i32
    %c8_i32 = arith.constant 8 : i32
    %88 = arith.muli %c0_i32, %c8_i32 : i32
    %89 = tpu.assume_multiple %88, 8 : i32
    %90 = arith.index_cast %89 : i32 to index
    %c0_56 = arith.constant 0 : index
    %91 = vector.load %arg22[%90, %c0_56] : memref<8x16xf32, #tpu.memory_space<vmem>>, vector<8x16xf32>
    %92 = arith.index_cast %89 : i32 to index
    %c0_57 = arith.constant 0 : index
    %93 = vector.load %arg23[%92, %c0_57] : memref<8x16xf32, #tpu.memory_space<vmem>>, vector<8x16xf32>
    %94 = arith.index_cast %89 : i32 to index
    %c0_58 = arith.constant 0 : index
    %95 = vector.load %arg24[%94, %c0_58] : memref<8x8xf32, #tpu.memory_space<vmem>>, vector<8x8xf32>
    %96 = arith.index_cast %89 : i32 to index
    %c0_59 = arith.constant 0 : index
    %97 = vector.load %arg25[%96, %c0_59] : memref<8x8xf32, #tpu.memory_space<vmem>>, vector<8x8xf32>
    %98 = vector.extract_strided_slice %91 {offsets = [0, 0], sizes = [1, 16], strides = [1, 1]} : vector<8x16xf32> to vector<1x16xf32>
    %99 = vector.broadcast %98 : vector<1x16xf32> to vector<8x16xf32>
    %100 = arith.mulf %99, %86 : vector<8x16xf32>
    %101 = math.exp %100 : vector<8x16xf32>
    %102 = vector.extract_strided_slice %91 {offsets = [1, 0], sizes = [1, 16], strides = [1, 1]} : vector<8x16xf32> to vector<1x16xf32>
    %103 = vector.broadcast %102 : vector<1x16xf32> to vector<8x16xf32>
    %104 = arith.mulf %103, %86 : vector<8x16xf32>
    %105 = math.exp %104 : vector<8x16xf32>
    %106 = vector.extract_strided_slice %91 {offsets = [2, 0], sizes = [1, 16], strides = [1, 1]} : vector<8x16xf32> to vector<1x16xf32>
    %107 = vector.broadcast %106 : vector<1x16xf32> to vector<8x16xf32>
    %108 = arith.mulf %107, %86 : vector<8x16xf32>
    %109 = math.exp %108 : vector<8x16xf32>
    %110 = vector.extract_strided_slice %91 {offsets = [3, 0], sizes = [1, 16], strides = [1, 1]} : vector<8x16xf32> to vector<1x16xf32>
    %111 = vector.broadcast %110 : vector<1x16xf32> to vector<8x16xf32>
    %112 = arith.mulf %111, %86 : vector<8x16xf32>
    %113 = math.exp %112 : vector<8x16xf32>
    %114 = vector.extract_strided_slice %91 {offsets = [4, 0], sizes = [1, 16], strides = [1, 1]} : vector<8x16xf32> to vector<1x16xf32>
    %115 = vector.broadcast %114 : vector<1x16xf32> to vector<8x16xf32>
    %116 = arith.mulf %115, %86 : vector<8x16xf32>
    %117 = math.exp %116 : vector<8x16xf32>
    %118 = vector.extract_strided_slice %91 {offsets = [5, 0], sizes = [1, 16], strides = [1, 1]} : vector<8x16xf32> to vector<1x16xf32>
    %119 = vector.broadcast %118 : vector<1x16xf32> to vector<8x16xf32>
    %120 = arith.mulf %119, %86 : vector<8x16xf32>
    %121 = math.exp %120 : vector<8x16xf32>
    %122 = vector.extract_strided_slice %91 {offsets = [6, 0], sizes = [1, 16], strides = [1, 1]} : vector<8x16xf32> to vector<1x16xf32>
    %123 = vector.broadcast %122 : vector<1x16xf32> to vector<8x16xf32>
    %124 = arith.mulf %123, %86 : vector<8x16xf32>
    %125 = math.exp %124 : vector<8x16xf32>
    %126 = vector.extract_strided_slice %91 {offsets = [7, 0], sizes = [1, 16], strides = [1, 1]} : vector<8x16xf32> to vector<1x16xf32>
    %127 = vector.broadcast %126 : vector<1x16xf32> to vector<8x16xf32>
    %128 = arith.mulf %127, %86 : vector<8x16xf32>
    %129 = math.exp %128 : vector<8x16xf32>
    %130 = vector.extract_strided_slice %95 {offsets = [0, 0], sizes = [1, 8], strides = [1, 1]} : vector<8x8xf32> to vector<1x8xf32>
    %131 = tpu.transpose %130, [1, 0] : vector<1x8xf32> -> vector<8x1xf32>
    %132 = vector.extract_strided_slice %93 {offsets = [0, 0], sizes = [1, 16], strides = [1, 1]} : vector<8x16xf32> to vector<1x16xf32>
    %133 = vector.broadcast %131 : vector<8x1xf32> to vector<8x16xf32>
    %134 = vector.broadcast %132 : vector<1x16xf32> to vector<8x16xf32>
    %135 = arith.mulf %133, %134 : vector<8x16xf32>
    %136 = vector.extract_strided_slice %95 {offsets = [1, 0], sizes = [1, 8], strides = [1, 1]} : vector<8x8xf32> to vector<1x8xf32>
    %137 = tpu.transpose %136, [1, 0] : vector<1x8xf32> -> vector<8x1xf32>
    %138 = vector.extract_strided_slice %93 {offsets = [1, 0], sizes = [1, 16], strides = [1, 1]} : vector<8x16xf32> to vector<1x16xf32>
    %139 = vector.broadcast %137 : vector<8x1xf32> to vector<8x16xf32>
    %140 = vector.broadcast %138 : vector<1x16xf32> to vector<8x16xf32>
    %141 = arith.mulf %139, %140 : vector<8x16xf32>
    %142 = vector.extract_strided_slice %95 {offsets = [2, 0], sizes = [1, 8], strides = [1, 1]} : vector<8x8xf32> to vector<1x8xf32>
    %143 = tpu.transpose %142, [1, 0] : vector<1x8xf32> -> vector<8x1xf32>
    %144 = vector.extract_strided_slice %93 {offsets = [2, 0], sizes = [1, 16], strides = [1, 1]} : vector<8x16xf32> to vector<1x16xf32>
    %145 = vector.broadcast %143 : vector<8x1xf32> to vector<8x16xf32>
    %146 = vector.broadcast %144 : vector<1x16xf32> to vector<8x16xf32>
    %147 = arith.mulf %145, %146 : vector<8x16xf32>
    %148 = vector.extract_strided_slice %95 {offsets = [3, 0], sizes = [1, 8], strides = [1, 1]} : vector<8x8xf32> to vector<1x8xf32>
    %149 = tpu.transpose %148, [1, 0] : vector<1x8xf32> -> vector<8x1xf32>
    %150 = vector.extract_strided_slice %93 {offsets = [3, 0], sizes = [1, 16], strides = [1, 1]} : vector<8x16xf32> to vector<1x16xf32>
    %151 = vector.broadcast %149 : vector<8x1xf32> to vector<8x16xf32>
    %152 = vector.broadcast %150 : vector<1x16xf32> to vector<8x16xf32>
    %153 = arith.mulf %151, %152 : vector<8x16xf32>
    %154 = vector.extract_strided_slice %95 {offsets = [4, 0], sizes = [1, 8], strides = [1, 1]} : vector<8x8xf32> to vector<1x8xf32>
    %155 = tpu.transpose %154, [1, 0] : vector<1x8xf32> -> vector<8x1xf32>
    %156 = vector.extract_strided_slice %93 {offsets = [4, 0], sizes = [1, 16], strides = [1, 1]} : vector<8x16xf32> to vector<1x16xf32>
    %157 = vector.broadcast %155 : vector<8x1xf32> to vector<8x16xf32>
    %158 = vector.broadcast %156 : vector<1x16xf32> to vector<8x16xf32>
    %159 = arith.mulf %157, %158 : vector<8x16xf32>
    %160 = vector.extract_strided_slice %95 {offsets = [5, 0], sizes = [1, 8], strides = [1, 1]} : vector<8x8xf32> to vector<1x8xf32>
    %161 = tpu.transpose %160, [1, 0] : vector<1x8xf32> -> vector<8x1xf32>
    %162 = vector.extract_strided_slice %93 {offsets = [5, 0], sizes = [1, 16], strides = [1, 1]} : vector<8x16xf32> to vector<1x16xf32>
    %163 = vector.broadcast %161 : vector<8x1xf32> to vector<8x16xf32>
    %164 = vector.broadcast %162 : vector<1x16xf32> to vector<8x16xf32>
    %165 = arith.mulf %163, %164 : vector<8x16xf32>
    %166 = vector.extract_strided_slice %95 {offsets = [6, 0], sizes = [1, 8], strides = [1, 1]} : vector<8x8xf32> to vector<1x8xf32>
    %167 = tpu.transpose %166, [1, 0] : vector<1x8xf32> -> vector<8x1xf32>
    %168 = vector.extract_strided_slice %93 {offsets = [6, 0], sizes = [1, 16], strides = [1, 1]} : vector<8x16xf32> to vector<1x16xf32>
    %169 = vector.broadcast %167 : vector<8x1xf32> to vector<8x16xf32>
    %170 = vector.broadcast %168 : vector<1x16xf32> to vector<8x16xf32>
    %171 = arith.mulf %169, %170 : vector<8x16xf32>
    %172 = vector.extract_strided_slice %95 {offsets = [7, 0], sizes = [1, 8], strides = [1, 1]} : vector<8x8xf32> to vector<1x8xf32>
    %173 = tpu.transpose %172, [1, 0] : vector<1x8xf32> -> vector<8x1xf32>
    %174 = vector.extract_strided_slice %93 {offsets = [7, 0], sizes = [1, 16], strides = [1, 1]} : vector<8x16xf32> to vector<1x16xf32>
    %175 = vector.broadcast %173 : vector<8x1xf32> to vector<8x16xf32>
    %176 = vector.broadcast %174 : vector<1x16xf32> to vector<8x16xf32>
    %177 = arith.mulf %175, %176 : vector<8x16xf32>
    %178 = vector.extract_strided_slice %97 {offsets = [0, 0], sizes = [1, 8], strides = [1, 1]} : vector<8x8xf32> to vector<1x8xf32>
    %179 = tpu.transpose %178, [1, 0] : vector<1x8xf32> -> vector<8x1xf32>
    %180 = vector.extract_strided_slice %97 {offsets = [1, 0], sizes = [1, 8], strides = [1, 1]} : vector<8x8xf32> to vector<1x8xf32>
    %181 = tpu.transpose %180, [1, 0] : vector<1x8xf32> -> vector<8x1xf32>
    %182 = vector.extract_strided_slice %97 {offsets = [2, 0], sizes = [1, 8], strides = [1, 1]} : vector<8x8xf32> to vector<1x8xf32>
    %183 = tpu.transpose %182, [1, 0] : vector<1x8xf32> -> vector<8x1xf32>
    %184 = vector.extract_strided_slice %97 {offsets = [3, 0], sizes = [1, 8], strides = [1, 1]} : vector<8x8xf32> to vector<1x8xf32>
    %185 = tpu.transpose %184, [1, 0] : vector<1x8xf32> -> vector<8x1xf32>
    %186 = vector.extract_strided_slice %97 {offsets = [4, 0], sizes = [1, 8], strides = [1, 1]} : vector<8x8xf32> to vector<1x8xf32>
    %187 = tpu.transpose %186, [1, 0] : vector<1x8xf32> -> vector<8x1xf32>
    %188 = vector.extract_strided_slice %97 {offsets = [5, 0], sizes = [1, 8], strides = [1, 1]} : vector<8x8xf32> to vector<1x8xf32>
    %189 = tpu.transpose %188, [1, 0] : vector<1x8xf32> -> vector<8x1xf32>
    %190 = vector.extract_strided_slice %97 {offsets = [6, 0], sizes = [1, 8], strides = [1, 1]} : vector<8x8xf32> to vector<1x8xf32>
    %191 = tpu.transpose %190, [1, 0] : vector<1x8xf32> -> vector<8x1xf32>
    %192 = vector.extract_strided_slice %97 {offsets = [7, 0], sizes = [1, 8], strides = [1, 1]} : vector<8x8xf32> to vector<1x8xf32>
    %193 = tpu.transpose %192, [1, 0] : vector<1x8xf32> -> vector<8x1xf32>
    %194 = arith.mulf %101, %87 : vector<8x16xf32>
    %195 = arith.addf %194, %135 : vector<8x16xf32>
    %196 = vector.broadcast %179 : vector<8x1xf32> to vector<8x16xf32>
    %197 = arith.mulf %196, %195 : vector<8x16xf32>
    %cst_60 = arith.constant dense<0.000000e+00> : vector<16xf32>
    %198 = vector.multi_reduction <add>, %197, %cst_60 [0] : vector<8x16xf32> to vector<16xf32>
    %199 = vector.shape_cast %198 : vector<16xf32> to vector<1x16xf32>
    %200 = arith.mulf %105, %195 : vector<8x16xf32>
    %201 = arith.addf %200, %141 : vector<8x16xf32>
    %202 = vector.broadcast %181 : vector<8x1xf32> to vector<8x16xf32>
    %203 = arith.mulf %202, %201 : vector<8x16xf32>
    %cst_61 = arith.constant dense<0.000000e+00> : vector<16xf32>
    %204 = vector.multi_reduction <add>, %203, %cst_61 [0] : vector<8x16xf32> to vector<16xf32>
    %205 = vector.shape_cast %204 : vector<16xf32> to vector<1x16xf32>
    %206 = arith.mulf %109, %201 : vector<8x16xf32>
    %207 = arith.addf %206, %147 : vector<8x16xf32>
    %208 = vector.broadcast %183 : vector<8x1xf32> to vector<8x16xf32>
    %209 = arith.mulf %208, %207 : vector<8x16xf32>
    %cst_62 = arith.constant dense<0.000000e+00> : vector<16xf32>
    %210 = vector.multi_reduction <add>, %209, %cst_62 [0] : vector<8x16xf32> to vector<16xf32>
    %211 = vector.shape_cast %210 : vector<16xf32> to vector<1x16xf32>
    %212 = arith.mulf %113, %207 : vector<8x16xf32>
    %213 = arith.addf %212, %153 : vector<8x16xf32>
    %214 = vector.broadcast %185 : vector<8x1xf32> to vector<8x16xf32>
    %215 = arith.mulf %214, %213 : vector<8x16xf32>
    %cst_63 = arith.constant dense<0.000000e+00> : vector<16xf32>
    %216 = vector.multi_reduction <add>, %215, %cst_63 [0] : vector<8x16xf32> to vector<16xf32>
    %217 = vector.shape_cast %216 : vector<16xf32> to vector<1x16xf32>
    %218 = arith.mulf %117, %213 : vector<8x16xf32>
    %219 = arith.addf %218, %159 : vector<8x16xf32>
    %220 = vector.broadcast %187 : vector<8x1xf32> to vector<8x16xf32>
    %221 = arith.mulf %220, %219 : vector<8x16xf32>
    %cst_64 = arith.constant dense<0.000000e+00> : vector<16xf32>
    %222 = vector.multi_reduction <add>, %221, %cst_64 [0] : vector<8x16xf32> to vector<16xf32>
    %223 = vector.shape_cast %222 : vector<16xf32> to vector<1x16xf32>
    %224 = arith.mulf %121, %219 : vector<8x16xf32>
    %225 = arith.addf %224, %165 : vector<8x16xf32>
    %226 = vector.broadcast %189 : vector<8x1xf32> to vector<8x16xf32>
    %227 = arith.mulf %226, %225 : vector<8x16xf32>
    %cst_65 = arith.constant dense<0.000000e+00> : vector<16xf32>
    %228 = vector.multi_reduction <add>, %227, %cst_65 [0] : vector<8x16xf32> to vector<16xf32>
    %229 = vector.shape_cast %228 : vector<16xf32> to vector<1x16xf32>
    %230 = arith.mulf %125, %225 : vector<8x16xf32>
    %231 = arith.addf %230, %171 : vector<8x16xf32>
    %232 = vector.broadcast %191 : vector<8x1xf32> to vector<8x16xf32>
    %233 = arith.mulf %232, %231 : vector<8x16xf32>
    %cst_66 = arith.constant dense<0.000000e+00> : vector<16xf32>
    %234 = vector.multi_reduction <add>, %233, %cst_66 [0] : vector<8x16xf32> to vector<16xf32>
    %235 = vector.shape_cast %234 : vector<16xf32> to vector<1x16xf32>
    %236 = arith.mulf %129, %231 : vector<8x16xf32>
    %237 = arith.addf %236, %177 : vector<8x16xf32>
    %238 = vector.broadcast %193 : vector<8x1xf32> to vector<8x16xf32>
    %239 = arith.mulf %238, %237 : vector<8x16xf32>
    %cst_67 = arith.constant dense<0.000000e+00> : vector<16xf32>
    %240 = vector.multi_reduction <add>, %239, %cst_67 [0] : vector<8x16xf32> to vector<16xf32>
    %241 = vector.shape_cast %240 : vector<16xf32> to vector<1x16xf32>
    %242 = tpu.concatenate %199, %205, %211, %217, %223, %229, %235, %241 in 0 : vector<1x16xf32>, vector<1x16xf32>, vector<1x16xf32>, vector<1x16xf32>, vector<1x16xf32>, vector<1x16xf32>, vector<1x16xf32>, vector<1x16xf32> -> vector<8x16xf32>
    %243 = arith.index_cast %89 : i32 to index
    %c0_68 = arith.constant 0 : index
    %244 = vector.load %arg22[%243, %c0_68] : memref<8x16xf32, #tpu.memory_space<vmem>>, vector<8x16xf32>
    tpu.vector_store %arg22[%243, %c0_68], %242 {strides = array<i32>} : memref<8x16xf32, #tpu.memory_space<vmem>>, vector<8x16xf32>,
    %c1_i32_69 = arith.constant 1 : i32
    %c0_70 = arith.constant 0 : index
    %c0_71 = arith.constant 0 : index
    %245 = vector.load %arg22[%c0_70, %c0_71] : memref<8x16xf32, #tpu.memory_space<vmem>>, vector<8x16xf32>
    %c0_72 = arith.constant 0 : index
    %c0_73 = arith.constant 0 : index
    %246 = vector.load %arg19[%c0_72, %c0_73] : memref<1x16xf32, #tpu.memory_space<vmem>>, vector<1x16xf32>
    %247 = vector.broadcast %246 : vector<1x16xf32> to vector<8x16xf32>
    %248 = arith.mulf %52, %247 : vector<8x16xf32>
    %249 = arith.addf %245, %248 : vector<8x16xf32>
    %cst_74 = arith.constant 0.000000e+00 : f32
    %250 = vector.broadcast %cst_74 : f32 to vector<8x16xf32>
    %251 = arith.subf %250, %11 : vector<8x16xf32>
    %252 = math.exp %251 : vector<8x16xf32>
    %cst_75 = arith.constant 1.000000e+00 : f32
    %253 = vector.broadcast %cst_75 : f32 to vector<8x16xf32>
    %254 = arith.addf %253, %252 : vector<8x16xf32>
    %255 = arith.divf %11, %254 : vector<8x16xf32>
    %256 = arith.mulf %249, %255 : vector<8x16xf32>
    %c0_76 = arith.constant 0 : index
    %c0_77 = arith.constant 0 : index
    %257 = vector.load %arg16[%c0_76, %c0_77] : memref<16x32xf32, #tpu.memory_space<vmem>>, vector<16x32xf32>
    %cst_78 = arith.constant dense<0.000000e+00> : vector<8x32xf32>
    %258 = tpu.matmul %256, %257, %cst_78 {dimension_numbers = #tpu.dot_dimension_numbers<[1], [0], [0], [1], [0, 0, 1, 1], [], []>} : vector<8x16xf32>, vector<16x32xf32>, vector<8x32xf32> -> vector<8x32xf32>
    %c0_79 = arith.constant 0 : index
    %c0_80 = arith.constant 0 : index
    %259 = vector.load %arg17[%c0_79, %c0_80] : memref<1x32xf32, #tpu.memory_space<vmem>>, vector<1x32xf32>
    %260 = vector.broadcast %259 : vector<1x32xf32> to vector<8x32xf32>
    %261 = arith.addf %258, %260 : vector<8x32xf32>
    %262 = arith.mulf %261, %261 : vector<8x32xf32>
    %cst_81 = arith.constant dense<0.000000e+00> : vector<8xf32>
    %263 = vector.multi_reduction <add>, %262, %cst_81 [1] : vector<8x32xf32> to vector<8xf32>
    %264 = vector.shape_cast %263 : vector<8xf32> to vector<8x1xf32>
    %cst_82 = arith.constant 3.200000e+01 : f32
    %265 = vector.broadcast %cst_82 : f32 to vector<8x1xf32>
    %266 = arith.divf %264, %265 : vector<8x1xf32>
    %cst_83 = arith.constant 1.000000e-15 : f32
    %267 = vector.broadcast %cst_83 : f32 to vector<8x1xf32>
    %268 = arith.addf %266, %267 : vector<8x1xf32>
    %269 = math.rsqrt %268 : vector<8x1xf32>
    %270 = vector.broadcast %269 : vector<8x1xf32> to vector<8x32xf32>
    %271 = arith.mulf %261, %270 : vector<8x32xf32>
    %c0_84 = arith.constant 0 : index
    %c0_85 = arith.constant 0 : index
    %272 = vector.load %arg20[%c0_84, %c0_85] : memref<1x32xf32, #tpu.memory_space<vmem>>, vector<1x32xf32>
    %273 = vector.broadcast %272 : vector<1x32xf32> to vector<8x32xf32>
    %274 = arith.mulf %271, %273 : vector<8x32xf32>
    %275 = arith.addf %1, %274 : vector<8x32xf32>
    %c0_86 = arith.constant 0 : index
    %c0_87 = arith.constant 0 : index
    %c0_88 = arith.constant 0 : index
    %276 = vector.load %arg21[%c0_86, %c0_87, %c0_88] : memref<1x8x32xf32, #tpu.memory_space<vmem>>, vector<1x8x32xf32>
    %277 = vector.shape_cast %276 : vector<1x8x32xf32> to vector<8x32xf32>
    %278 = vector.shape_cast %275 : vector<8x32xf32> to vector<1x8x32xf32>
    tpu.vector_store %arg21[%c0_86, %c0_87, %c0_88], %278 {strides = array<i32>} : memref<1x8x32xf32, #tpu.memory_space<vmem>>, vector<1x8x32xf32>,
    return
  }
  func.func @transform_0(%arg0: i32) -> (i32, i32, i32) {
    %c0_i32 = arith.constant 0 : i32
    %c0_i32_0 = arith.constant 0 : i32
    %c0_i32_1 = arith.constant 0 : i32
    return %arg0, %c0_i32, %c0_i32_0 : i32, i32, i32
  }
  func.func @transform_1(%arg0: i32) -> (i32, i32) {
    %c0_i32 = arith.constant 0 : i32
    %c0_i32_0 = arith.constant 0 : i32
    %c0_i32_1 = arith.constant 0 : i32
    return %c0_i32, %c0_i32_0 : i32, i32
  }
  func.func @transform_2(%arg0: i32) -> (i32, i32) {
    %c0_i32 = arith.constant 0 : i32
    %c0_i32_0 = arith.constant 0 : i32
    %c0_i32_1 = arith.constant 0 : i32
    return %c0_i32, %c0_i32_0 : i32, i32
  }
  func.func @transform_3(%arg0: i32) -> (i32, i32) {
    %c0_i32 = arith.constant 0 : i32
    %c0_i32_0 = arith.constant 0 : i32
    %c0_i32_1 = arith.constant 0 : i32
    return %c0_i32, %c0_i32_0 : i32, i32
  }
  func.func @transform_4(%arg0: i32) -> (i32, i32) {
    %c0_i32 = arith.constant 0 : i32
    %c0_i32_0 = arith.constant 0 : i32
    %c0_i32_1 = arith.constant 0 : i32
    return %c0_i32, %c0_i32_0 : i32, i32
  }
  func.func @transform_5(%arg0: i32) -> (i32, i32) {
    %c0_i32 = arith.constant 0 : i32
    %c0_i32_0 = arith.constant 0 : i32
    %c0_i32_1 = arith.constant 0 : i32
    return %c0_i32, %c0_i32_0 : i32, i32
  }
  func.func @transform_6(%arg0: i32) -> (i32, i32) {
    %c0_i32 = arith.constant 0 : i32
    %c0_i32_0 = arith.constant 0 : i32
    %c0_i32_1 = arith.constant 0 : i32
    return %c0_i32, %c0_i32_0 : i32, i32
  }
  func.func @transform_7(%arg0: i32) -> (i32, i32) {
    %c0_i32 = arith.constant 0 : i32
    %c0_i32_0 = arith.constant 0 : i32
    %c0_i32_1 = arith.constant 0 : i32
    return %c0_i32, %c0_i32_0 : i32, i32
  }
  func.func @transform_8(%arg0: i32) -> (i32, i32) {
    %c0_i32 = arith.constant 0 : i32
    %c0_i32_0 = arith.constant 0 : i32
    %c0_i32_1 = arith.constant 0 : i32
    return %c0_i32, %c0_i32_0 : i32, i32
  }
  func.func @transform_9(%arg0: i32) -> (i32, i32) {
    %c0_i32 = arith.constant 0 : i32
    %c0_i32_0 = arith.constant 0 : i32
    %c0_i32_1 = arith.constant 0 : i32
    return %c0_i32, %c0_i32_0 : i32, i32
  }
  func.func @transform_10(%arg0: i32) -> (i32, i32) {
    %c0_i32 = arith.constant 0 : i32
    %c0_i32_0 = arith.constant 0 : i32
    %c0_i32_1 = arith.constant 0 : i32
    return %c0_i32, %c0_i32_0 : i32, i32
  }
  func.func @transform_11(%arg0: i32) -> (i32, i32) {
    %c0_i32 = arith.constant 0 : i32
    %c0_i32_0 = arith.constant 0 : i32
    %c0_i32_1 = arith.constant 0 : i32
    return %c0_i32, %c0_i32_0 : i32, i32
  }
  func.func @transform_12(%arg0: i32) -> (i32, i32) {
    %c0_i32 = arith.constant 0 : i32
    %c0_i32_0 = arith.constant 0 : i32
    %c0_i32_1 = arith.constant 0 : i32
    return %c0_i32, %c0_i32_0 : i32, i32
  }
  func.func @transform_13(%arg0: i32) -> (i32, i32) {
    %c0_i32 = arith.constant 0 : i32
    %c0_i32_0 = arith.constant 0 : i32
    %c0_i32_1 = arith.constant 0 : i32
    return %c0_i32, %c0_i32_0 : i32, i32
  }
  func.func @transform_14(%arg0: i32) -> (i32, i32) {
    %c0_i32 = arith.constant 0 : i32
    %c0_i32_0 = arith.constant 0 : i32
    %c0_i32_1 = arith.constant 0 : i32
    return %c0_i32, %c0_i32_0 : i32, i32
  }
  func.func @transform_15(%arg0: i32) -> (i32, i32) {
    %c0_i32 = arith.constant 0 : i32
    %c0_i32_0 = arith.constant 0 : i32
    %c0_i32_1 = arith.constant 0 : i32
    return %c0_i32, %c0_i32_0 : i32, i32
  }
  func.func @transform_16(%arg0: i32) -> (i32, i32) {
    %c0_i32 = arith.constant 0 : i32
    %c0_i32_0 = arith.constant 0 : i32
    %c0_i32_1 = arith.constant 0 : i32
    return %c0_i32, %c0_i32_0 : i32, i32
  }
  func.func @transform_17(%arg0: i32) -> (i32, i32) {
    %c0_i32 = arith.constant 0 : i32
    %c0_i32_0 = arith.constant 0 : i32
    %c0_i32_1 = arith.constant 0 : i32
    return %c0_i32, %c0_i32_0 : i32, i32
  }
  func.func @transform_18(%arg0: i32) -> (i32, i32) {
    %c0_i32 = arith.constant 0 : i32
    %c0_i32_0 = arith.constant 0 : i32
    %c0_i32_1 = arith.constant 0 : i32
    return %c0_i32, %c0_i32_0 : i32, i32
  }
  func.func @transform_19(%arg0: i32) -> (i32, i32) {
    %c0_i32 = arith.constant 0 : i32
    %c0_i32_0 = arith.constant 0 : i32
    %c0_i32_1 = arith.constant 0 : i32
    return %c0_i32, %c0_i32_0 : i32, i32
  }
  func.func @transform_20(%arg0: i32) -> (i32, i32, i32) {
    %c0_i32 = arith.constant 0 : i32
    %c0_i32_0 = arith.constant 0 : i32
    %c0_i32_1 = arith.constant 0 : i32
    return %arg0, %c0_i32, %c0_i32_0 : i32, i32, i32
  }
}

</mosaic_0001>

<bundles_post_ra>
// kernel: tpu_custom_call.1
= control target key start
LH: loop header
LB: loop body
LE: loop exit
PB: predicated region body
PF: predicated region fallthrough
CT: control target
= control target key end

     0   :  { %s2896_s0 = inlined_call_operand.vmem [shape: f32[2,8,32], index: 0, kind: input, shape index: {}]   ;;  %s2897_s1 = inlined_call_operand.vmem [shape: f32[32,16], index: 1, kind: input, shape index: {}]   ;;  %s2898_s2 = inlined_call_operand.vmem [shape: f32[1,16], index: 2, kind: input, shape index: {}]   ;;  %s2899_s3 = inlined_call_operand.vmem [shape: f32[32,16], index: 3, kind: input, shape index: {}]   ;;  %s2900_s4 = inlined_call_operand.vmem [shape: f32[1,16], index: 4, kind: input, shape index: {}]   ;;  %s2901_s5 = inlined_call_operand.vmem [shape: f32[4,16], index: 5, kind: input, shape index: {}]   ;;  %s2902_s6 = inlined_call_operand.vmem [shape: f32[1,16], index: 6, kind: input, shape index: {}]   ;;  %s2903_s7 = inlined_call_operand.vmem [shape: f32[16,4], index: 7, kind: input, shape index: {}]   ;;  %s2904_s8 = inlined_call_operand.vmem [shape: f32[1,4], index: 8, kind: input, shape index: {}]   ;;  %s2905_s9 = inlined_call_operand.vmem [shape: f32[16,8], index: 9, kind: input, shape index: {}]   ;;  %s2906_s10 = inlined_call_operand.vmem [shape: f32[1,8], index: 10, kind: input, shape index: {}]   ;;  %s2907_s11 = inlined_call_operand.vmem [shape: f32[16,8], index: 11, kind: input, shape index: {}]   ;;  %s2908_s12 = inlined_call_operand.vmem [shape: f32[1,8], index: 12, kind: input, shape index: {}]   ;;  %s2909_s13 = inlined_call_operand.vmem [shape: f32[4,16], index: 13, kind: input, shape index: {}]   ;;  %s2910_s14 = inlined_call_operand.vmem [shape: f32[1,16], index: 14, kind: input, shape index: {}]   ;;  %s2911_s15 = inlined_call_operand.vmem [shape: f32[16,32], index: 15, kind: input, shape index: {}]   ;;  %s2912_s16 = inlined_call_operand.vmem [shape: f32[1,32], index: 16, kind: input, shape index: {}]   ;;  %s2913_s17 = inlined_call_operand.vmem [shape: f32[8,16], index: 17, kind: input, shape index: {}]   ;;  %s2914_s18 = inlined_call_operand.vmem [shape: f32[1,16], index: 18, kind: input, shape index: {}]   ;;  %s2915_s19 = inlined_call_operand.vmem [shape: f32[1,32], index: 19, kind: input, shape index: {}]   ;;  %s2916_s20 = inlined_call_operand.hbm [shape: f32[2,8,32], index: 20, kind: output, shape index: {}]  }
   0x1   :  { %2926 = sst [smem:[#allocation15_spill]] %s2896_s0 }
   0x2   :  { %2927 = sst [smem:[#allocation16_spill]] %s2897_s1 }
   0x3   :  { %2928 = sst [smem:[#allocation17_spill]] %s2898_s2 }
   0x4   :  { %2929 = sst [smem:[#allocation18_spill]] %s2899_s3 }
   0x5   :  { %2930 = sst [smem:[#allocation19_spill]] %s2900_s4 }
   0x6   :  { %25 = vsyncpa [#allocation7], 0 }
   0x7   :  { %27 = vsyncpa [#allocation7 + $0x1], 0  ;;  %s2577_s1 = smov 0   ;;  %s2579_s22 = smov 0  }
   0x8   :  { %s2581_s23 = smov 0   ;;  %s2583_s24 = smov 0  }
   0x9 LB: > { %2931 = sst [smem:[#allocation9_spill]] %s2453_s1  ;;  %s2598_s2 = sadd.s32 4294967295, %s2465_s24   ;;  %s2465_s24 = sphi %s2583_s24, %s2948_s24   ;;  %s2461_s23 = sphi %s2581_s23, %s2950_s23   ;;  %s2457_s22 = sphi %s2579_s22, %s2952_s22   ;;  %s2453_s1 = sphi %s2577_s1, %s2951_s1  }
   0xa   : > { %2932 = sst [smem:[#allocation10_spill]] %s2461_s23  ;;  %s2197_s25 = sadd.s32 4294967294, %s2465_s24  }
   0xb   : > { %2933 = sst [smem:[#allocation11_spill]] %s2465_s24  ;;  %s2602_s3 = sadd.s32 1, %s2465_s24  }
   0xc   : > { %2934 = sst [smem:[#allocation12_spill]] %s2602_s3  ;;  %s465_s26 = sadd.s32 1, %s2461_s23 }
   0xd   : > { %s462_s27 = ssub.s32 %s2465_s24, %s2602_s3  ;;  %p475_p0 = scmp.ne.s32.totalorder %s2461_s23, %s2457_s22 }
   0xe   : > { %p463_p1 = scmp.eq.s32.totalorder %s462_s27, 0  ;;  %p476_p2 = scmp.eq.s32.totalorder %s2598_s2, 1 }
   0xf   : > { %p481_p3 = scmp.ne.s32.totalorder %s2457_s22, %s2453_s1  ;;  %p482_p4 = scmp.eq.s32.totalorder %s2197_s25, 1 }
  0x10   : > { %s2613_s28 = scalar_select %p463_p1, %s2461_s23, %s465_s26  }
  0x11   : > { %p2615_p5 = por %p476_p2, %p475_p0  ;;  %p2619_p6 = por %p482_p4, %p481_p3 }
  0x12   : > { %2935 = sst [smem:[#allocation13_spill]] %s2613_s28  ;;  %p2200_p7 = scmp.ge.s32.totalorder %s2465_s24, 1 }
  0x13   : > { %s2937_s29 = scalar_select %p2619_p6, 1, 0 }
  0x14   : > { %p564_p8 = scmp.lt.s32.totalorder %s2465_s24, 3 }
  0x15   : > { %2938 = sst [smem:[#allocation14_spill]] %s2937_s29 }
  0x16   : > { %p565_p9 = pnand %p2200_p7, %p564_p8 }
  0x17   : > { %s2939_s21 = sld [smem:[#allocation16_spill]] (!%p565_p9)  ;;  %v2467_v3 = vmov (!%p565_p9), 0.0|0.0   ;;  %vm2468_vm0 = vmmov (!%p565_p9), 0   ;;  %v2469_v6 = vmov (!%p565_p9), 0.0   ;;  %p621_p10 = scmp.lt.s32.totalorder (!%p565_p9), %s2598_s2, 1  ;;  %vm637_vm1 = vcmask (!%p565_p9), 261120  }
  0x18   : > { %568 = sbr.rel (%p565_p9) target bundleno = 1431 (0x597), region = 100  ;;  %2304 = vmatprep.subr.bf16.mxu0 (!%p565_p9), %v2467_v3  ;;  %2257 = vmatprep.mubr.msk.f32.mxu0 (!%p565_p9), %vm2468_vm0, %v2469_v6  ;;  %s2940_s3 = sld [smem:[#allocation15_spill]] (!%p565_p9)  ;;  %v841_v9 = vld [vmem:[%s2903_s7] sm:$0xff] (!%p565_p9)  ;;  %v842_v10 = vld [vmem:[%s2903_s7 + $0x8] sm:$0xff] (!%p565_p9)  ;;  %vm936_vm2 = vcmask (!%p565_p9), 1043456   ;;  %v793_v19 = vlaneseq (!%p565_p9)  ;;  %vm850_vm6 = vcmask (!%p565_p9), 130048  }
  0x19   : > { %2310 = vmatprep.subr.bf16.mxu1 (!%p565_p9), %v2467_v3  ;;  %2268 = vmatprep.mubr.msk.f32.mxu1 (!%p565_p9), %vm2468_vm0, %v2469_v6  ;;  %v2317_v11 = vpack.c.bf16 (!%p565_p9), %v842_v10, %v841_v9  ;;  %s2941_s23 = sld [smem:[#allocation18_spill]] (!%p565_p9)  ;;  %v924_v18 = vld [vmem:[%s2909_s13] sm:$0xf] (!%p565_p9)  ;;  %s2943_s29 = sld [smem:[#allocation17_spill]] (!%p565_p9)  ;;  %v1026_v54 = vld [vmem:[%s2905_s9 + $0x8] sm:$0xff] (!%p565_p9)  ;;  %vm932_vm7 = vcmask (!%p565_p9), 31744  }
  0x1a   : > { %v2686_v20 = vshrl.u32 (!%p565_p9), %v793_v19, 7  ;;  %v792_v23 = vld [vmem:[%s2901_s5] sm:$0xf] (!%p565_p9)  ;;  %v1107_v59 = vld [vmem:[%s2907_s11 + $0x8] sm:$0xff] (!%p565_p9)  ;;  %vm1104_vm8 = vcmask (!%p565_p9), 64512   ;;  %s2944_s27 = sld [smem:[#allocation19_spill]] (!%p565_p9) }
  0x1b   : > { %v2207_v46 = vld [vmem:[%s2902_s6] ss:$0 sm:$0xff] (!%p565_p9)  ;;  %vm1992_vm10 = vcmask (!%p565_p9), 1040384   ;;  %vm1994_vm11 = vcmask (!%p565_p9), 1041408   ;;  %vm1996_vm12 = vcmask (!%p565_p9), 1042432   ;;  %vm1999_vm13 = vcmask (!%p565_p9), 1044480  }
  0x1c   : > { %v2689_v21 = vsub.s32 (!%p565_p9), 3, %v2686_v20  ;;  %v2698_v24 = vsub.s32 (!%p565_p9), 0, %v2686_v20  ;;  %v2701_v26 = vsub.s32 (!%p565_p9), 1, %v2686_v20  ;;  %vm801_vm3 = vcmp.ge.s32.totalorder (!%p565_p9), %v2686_v20, 3  ;;  %v1025_v53 = vld [vmem:[%s2905_s9] sm:$0xff] (!%p565_p9)  ;;  %s2222_s26 = sshll.u32 (!%p565_p9), %s2598_s2, 7 }
  0x1d   : > { %v626_v0 = vld [vmem:[%s2939_s21] sm:$0xff] (!%p565_p9)  ;;  %v627_v1 = vld [vmem:[%s2939_s21 + $0x8] sm:$0xff] (!%p565_p9)  ;;  %v628_v2 = vld [vmem:[%s2939_s21 + $0x10] sm:$0xff] (!%p565_p9)  ;;  %vm810_vm4 = vcmp.ge.s32.totalorder (!%p565_p9), %v2686_v20, 2  ;;  %v2708_v31 = vsub.s32 (!%p565_p9), 2, %v2686_v20  ;;  %vm819_vm5 = vcmp.ge.s32.totalorder (!%p565_p9), %v2686_v20, 1  ;;  %v2320_v56 = vpack.c.bf16 (!%p565_p9), %v1026_v54, %v1025_v53  ;;  %s2853_s24 = scalar_lea.hbm (!%p565_p9), %s2916_s20, %s2222_s26 }
  0x1e   : > { %v2305_v4 = vpack.c.bf16 (!%p565_p9), %v627_v1, %v626_v0  ;;  %v629_v5 = vld [vmem:[%s2939_s21 + $0x18] sm:$0xff] (!%p565_p9)  ;;  %v798_v28 = vrot.slane (!%p565_p9), %v792_v23, %v2689_v21  ;;  %v806_v30 = vrot.slane (!%p565_p9), %v792_v23, %v2698_v24  ;;  %v815_v35 = vrot.slane (!%p565_p9), %v792_v23, %v2701_v26  ;;  %v1106_v58 = vld [vmem:[%s2907_s11] sm:$0xff] (!%p565_p9) }
  0x1f   : > { %v2308_v7 = vpack.c.bf16 %v629_v5, %v628_v2  ;;  %s622_s28 = scalar_select %p621_p10, %s2598_s2, 1  ;;  %v711_v12 = vld [vmem:[%s2941_s23] sm:$0xff]  ;;  %v824_v40 = vrot.slane %v792_v23, %v2708_v31  ;;  %v2323_v62 = vpack.c.bf16 %v1107_v59, %v1106_v58  ;;  %vm2001_vm14 = vcmask 1045504  }
  0x20   : > { %2306 = vmatpush3.bf16.msra.mxu0 %v2305_v4  ;;  %v2203_v22 = vld [vmem:[%s2943_s29] ss:$0 sm:$0xff]  ;;  %vm2003_vm15 = vcmask 1046528   ;;  %s2471_s2 = smov [#allocation6]  }
  0x21   : > { %2307 = vmatprep.subr.bf16.mxu0 %v2467_v3  ;;  %s2202_s30 = sshll.u32 %s622_s28, 3  ;;  %v2208_v60 = vld [vmem:[%s2904_s8] ss:$0 sm:$0xff] }
  0x22   : > { %s624_s25 = scalar_lea.vmem %s2940_s3, %s2202_s30  ;;  %s2942_s3 = smov %s2941_s23  ;;  %v2213_v1 = vld [vmem:[%s2906_s10] ss:$0 sm:$0xff] }
  0x23   : > { %v2649_v8 = vld [vmem:[%s624_s25] sm:$0xff]  ;;  %v712_v13 = vld [vmem:[%s2942_s3 + $0x8] sm:$0xff]  ;;  %v713_v14 = vld [vmem:[%s2942_s3 + $0x10] sm:$0xff]  ;;  %s618_s30 = sand.u32 1, %s2457_s22  }
  0x24   : > { %2309 = vmatpush3.bf16.msra.mxu0 %v2308_v7  ;;  %v2311_v15 = vpack.c.bf16 %v712_v13, %v711_v12  ;;  %v714_v16 = vld [vmem:[%s2942_s3 + $0x18] sm:$0xff]  ;;  %s2201_s0 = sshll.u32 %s618_s30, 3  ;;  %s2125_s29 = scalar_lea.sflag [#allocation7], %s618_s30 }
  0x25   : > { %2316 = vmatprep.subr.bf16.mxu0 %v2467_v3  ;;  %v2314_v17 = vpack.c.bf16 %v714_v16, %v713_v14  ;;  %v2470_v16 = vmov 0   ;;  %s620_s21 = scalar_lea.vmem [#allocation6], %s2201_s0  ;;  %s2407_s0 = sshll.u32 %s2471_s2, 4  ;;  %s2408_s0 = int_to_ptr.vmem [resolvable:$false] %s2407_s0 }
  0x26   : > { %2312 = vmatpush3.bf16.msra.mxu1 %v2311_v15  ;;  %s2409_s25 = scalar_lea.vmem %s2408_s0, 256 }
  0x27   : > { %2258 = vmatmul.mubr.msk.f32.vlgmr.msra.gmra.mrb[0].mxu0 %vm637_vm1, %v2649_v8  ;;  %2313 = vmatprep.subr.bf16.mxu1 %v2467_v3 }
  0x28   : > { %2275 = vmatprep.mubr.msk.f32.mxu0 %vm2468_vm0, %v2469_v6  ;;  %2318 = vmatpush3.bf16.msra.mxu0 %v2317_v11 }
  0x29   : > { %2319 = vmatprep.subr.bf16.mxu0 %v2467_v3 }
  0x2a   : > { %2315 = vmatpush3.bf16.msra.mxu1 %v2314_v17 }
  0x2b   : > { %2278 = vmatprep.subr.mxu1 %v2469_v6 }
  0x2d   : > { %2269 = vmatmul.mubr.msk.f32.vlgmr.msra.gmra.mrb[0].mxu1 %vm637_vm1, %v2649_v8 }
  0x2e   : > { %2279 = vmatpush3.msk.msra.mxu1 %vm936_vm2, %v924_v18  ;;  %2280 = vmatprep.mubr.msk.f32.mxu1 %vm2468_vm0, %v2469_v6 }
  0x2f   : > { %2322 = vmatprep.subr.bf16.mxu1 %v2467_v3 }
  0xfa   : > { %v707_v25 = vpop.f32.mrb[0].mxu0 }
  0xfb   : > { %v708_v27 = vadd.f32 %v2203_v22, %v707_v25  ;;  %v2259_v29 = vpop.f32.mrb[1].mxu0 }
  0xfc   : > { %v2210_v29 = vld [vmem:[%s2910_s14] ss:$0 sm:$0xff] }
  0xfd   : > { %v800_v32 = vrot.slane %v708_v27, 5  ;;  %v809_v33 = vrot.slane %v708_v27, 6  ;;  %v818_v34 = vrot.slane %v708_v27, 7  ;;  %v799_v38 = vmul.f32 %v798_v28, %v708_v27 }
  0xff   : > { %v802_v36 = vsel %vm801_vm3, %v800_v32, 0.0  ;;  %v811_v37 = vsel %vm810_vm4, %v809_v33, 0.0  ;;  %v820_v41 = vsel %vm819_vm5, %v818_v34, 0.0  ;;  %v2215_v34 = vld [vmem:[%s2908_s12] ss:$0 sm:$0xff] }
 0x100   : > { %v807_v39 = vmul.f32 %v806_v30, %v802_v36  ;;  %v816_v43 = vmul.f32 %v815_v35, %v811_v37  ;;  %v825_v45 = vmul.f32 %v824_v40, %v820_v41  ;;  %v2750_v14 = vpop.f32.mrb[0].mxu1 }
 0x101   : > { %v2270_v15 = vpop.f32.mrb[1].mxu1 }
 0x102   : > { %v808_v42 = vadd.f32 %v807_v39, %v799_v38 }
 0x104   : > { %v817_v44 = vadd.f32 %v816_v43, %v808_v42 }
 0x106   : > { %v826_v47 = vadd.f32 %v825_v45, %v817_v44 }
 0x108   : > { %v834_v48 = vadd.f32 %v2207_v46, %v826_v47 }
 0x10a   : > { %v835_v49 = vsub.f32 0.0, %v834_v48 }
 0x10c   : > { %v836_v50 = vmul.f32 1.442695, %v835_v49 }
 0x10e   : > { %2373 = vpow2.f32 %v836_v50 }
 0x118   : > { %v2374_v51 = vpop.eup %2373 }
 0x119   : > { %v838_v52 = vadd.f32 1.0, %v2374_v51 }
 0x11b   : > { %2375 = vrcp.f32 %v838_v52 }
 0x125   : > { %v2376_v55 = vpop.eup %2375 }
 0x126   : > { %v2722_v57 = vmul.f32 %v2376_v55, %v834_v48 }
 0x128   : > { %2276 = vmatmul.mubr.msk.f32.vlgmr.msra.gmra.mrb[2].mxu0 %vm850_vm6, %v2722_v57 }
 0x129   : > { %2321 = vmatpush3.bf16.msra.mxu0 %v2320_v56  ;;  %2287 = vmatprep.mubr.msk.f32.mxu0 %vm2468_vm0, %v2469_v6 }
 0x12a   : > { %2325 = vmatprep.subr.bf16.mxu0 %v2467_v3 }
 0x12c   : > { %2288 = vmatmul.mubr.msk.f32.vlgmr.msra.gmra.mrb[4].mxu0 %vm850_vm6, %v2722_v57 }
 0x12d   : > { %2301 = vmatprep.mubr.msk.f32.mxu0 %vm2468_vm0, %v2469_v6 }
 0x1fb   : > { %v920_v61 = vpop.f32.mrb[2].mxu0 }
 0x1fc   : > { %v921_v63 = vadd.f32 %v2208_v60, %v920_v61  ;;  %v2277_v0 = vpop.f32.mrb[3].mxu0 }
 0x1fe   : > { %2281 = vmatmul.mubr.msk.f32.vlgmr.msra.gmra.mrb[2].mxu1 %vm932_vm7, %v921_v63 }
 0x1ff   : > { %2324 = vmatpush3.bf16.msra.mxu1 %v2323_v62  ;;  %v1100_v2 = vpop.f32.mrb[4].mxu0  ;;  %2294 = vmatprep.mubr.msk.f32.mxu1 %vm2468_vm0, %v2469_v6  ;;  %v1189_v62 = vld [vmem:[%s2913_s17] sm:$0xff] }
 0x200   : > { %v1101_v3 = vadd.f32 %v2213_v1, %v1100_v2  ;;  %v2289_v4 = vpop.f32.mrb[5].mxu0 }
 0x202   : > { %1105 = vst.msk [vmem:[#allocation4] sm:$0xff] %vm1104_vm8, %v1101_v3  ;;  %2295 = vmatmul.mubr.msk.f32.vlgmr.msra.gmra.mrb[4].mxu1 %vm850_vm6, %v2722_v57 }
 0x209   : > { %v1192_v5 = vld [vmem:[#allocation4] sm:$0xff] }
 0x20a   : > { %1250 = vxpose.xlu0.b32.start.end [1/1] (short) (narrow) %v1192_v5, 8  ;;  %v1337_v7 = vrot.slane %v1192_v5, 2  ;;  %v1293_v9 = vrot.slane %v1192_v5, 1  ;;  %v1381_v10 = vrot.slane %v1192_v5, 3  ;;  %v1425_v11 = vrot.slane %v1192_v5, 4 }
 0x20b   : > { %v1469_v12 = vrot.slane %v1192_v5, 5  ;;  %v1513_v6 = vrot.slane %v1192_v5, 6  ;;  %v1557_v13 = vrot.slane %v1192_v5, 7 }
 0x20c   : > { %1339 = vxpose.xlu1.b32.start.end [1/1] (short) (narrow) %v1337_v7, 8  ;;  %v1224_v7 = vsub.s32 4, %v2686_v20 }
 0x20e   : > { %1295 = vxpose.xlu0.b32.start.end [1/1] (short) (narrow) %v1293_v9, 8 }
 0x210   : > { %1383 = vxpose.xlu1.b32.start.end [1/1] (short) (narrow) %v1381_v10, 8 }
 0x212   : > { %1427 = vxpose.xlu0.b32.start.end [1/1] (short) (narrow) %v1425_v11, 8 }
 0x214   : > { %1471 = vxpose.xlu1.b32.start.end [1/1] (short) (narrow) %v1469_v12, 8  ;;  %v1231_v12 = vsub.s32 5, %v2686_v20 }
 0x216   : > { %1515 = vxpose.xlu0.b32.start.end [1/1] (short) (narrow) %v1513_v6, 8 }
 0x21a   : > { %1559 = vxpose.xlu0.b32.start.end [1/1] (short) (narrow) %v1557_v13, 8 }
 0x232   : > { %2372 = vset.pattern.permute.xlu1 %v2470_v16 }
 0x243   : > { %2371 = vset.pattern.permute.xlu0 %v2470_v16 }
 0x28a   : > { %v1266_v17 = vpop.trf.xlu0 }
 0x28b   : > { %1284 = vperm.xlu0 %2371, %v1266_v17   ;;  %v1238_v17 = vsub.s32 6, %v2686_v20 }
 0x28c   : > { %v1355_v18 = vpop.trf.xlu1 }
 0x28e   : > { %v1311_v19 = vpop.trf.xlu0 }
 0x28f   : > { %1329 = vperm.xlu1 %2372, %v1311_v19  }
 0x290   : > { %v1399_v22 = vpop.trf.xlu1 }
 0x292   : > { %v1443_v25 = vpop.trf.xlu0 }
 0x293   : > { %1373 = vperm.xlu1 %2372, %v1355_v18  }
 0x294   : > { %v1487_v23 = vpop.trf.xlu1 }
 0x295   : > { %1505 = vperm.xlu0 %2371, %v1487_v23  }
 0x296   : > { %v1531_v27 = vpop.trf.xlu0 }
 0x297   : > { %1417 = vperm.xlu1 %2372, %v1399_v22  }
 0x29a   : > { %v1575_v28 = vpop.trf.xlu0 }
 0x29b   : > { %1461 = vperm.xlu1 %2372, %v1443_v25  }
 0x29f   : > { %1549 = vperm.xlu1 %2372, %v1531_v27  }
 0x2a3   : > { %1593 = vperm.xlu1 %2372, %v1575_v28  }
 0x2d1   : > { %v1006_v30 = vpop.f32.mrb[2].mxu1 }
 0x2d2   : > { %v1007_v32 = vadd.f32 %v2210_v29, %v1006_v30  ;;  %v2282_v33 = vpop.f32.mrb[3].mxu1 }
 0x2d4   : > { %v1011_v35 = vand.u32 2147483647, %v1007_v32  ;;  %v1010_v58 = vmax.f32 %v1007_v32, 0.0  ;;  %v1245_v32 = vsub.s32 7, %v2686_v20 }
 0x2d5   : > { %v1181_v36 = vpop.f32.mrb[4].mxu1 }
 0x2d6   : > { %v1012_v37 = vsub.f32 0.0, %v1011_v35  ;;  %v1182_v38 = vadd.f32 %v2215_v34, %v1181_v36  ;;  %v2296_v39 = vpop.f32.mrb[5].mxu1 }
 0x2d8   : > { %v1013_v40 = vmul.f32 1.442695, %v1012_v37  ;;  %1185 = vst.msk [vmem:[#allocation5] sm:$0xff] %vm1104_vm8, %v1182_v38 }
 0x2da   : > { %2377 = vpow2.f32 %v1013_v40 }
 0x2df   : > { %v1193_v41 = vld [vmem:[#allocation5] sm:$0xff] }
 0x2e0   : > { %1601 = vxpose.xlu1.b32.start.end [1/1] (short) (narrow) %v1193_v41, 8  ;;  %v1634_v42 = vrot.slane %v1193_v41, 1  ;;  %v1668_v43 = vrot.slane %v1193_v41, 2  ;;  %v1736_v45 = vrot.slane %v1193_v41, 4  ;;  %v1702_v47 = vrot.slane %v1193_v41, 3 }
 0x2e1   : > { %v1804_v48 = vrot.slane %v1193_v41, 6  ;;  %v1770_v50 = vrot.slane %v1193_v41, 5  ;;  %v1838_v52 = vrot.slane %v1193_v41, 7 }
 0x2e2   : > { %1636 = vxpose.xlu0.b32.start.end [1/1] (short) (narrow) %v1634_v42, 8 }
 0x2e4   : > { %v2378_v44 = vpop.eup %2377  ;;  %1670 = vxpose.xlu1.b32.start.end [1/1] (short) (narrow) %v1668_v43, 8 }
 0x2e5   : > { %v1015_v46 = vadd.f32 1.0, %v2378_v44  ;;  %v1018_v49 = vmul.f32 -0.5, %v2378_v44  ;;  %v1021_v53 = vand.u32 2147483647, %v2378_v44 }
 0x2e6   : > { %1738 = vxpose.xlu0.b32.start.end [1/1] (short) (narrow) %v1736_v45, 8 }
 0x2e7   : > { %2379 = vlog2.f32 %v1015_v46  ;;  %v1019_v51 = vadd.f32 1.0, %v1018_v49  ;;  %vm1022_vm9 = vcmp.lt.f32.partialorder %v1021_v53, 0.0004427343 }
 0x2e8   : > { %1704 = vxpose.xlu1.b32.start.end [1/1] (short) (narrow) %v1702_v47, 8 }
 0x2e9   : > { %v1020_v56 = vmul.f32 %v2378_v44, %v1019_v51 }
 0x2ea   : > { %1806 = vxpose.xlu0.b32.start.end [1/1] (short) (narrow) %v1804_v48, 8 }
 0x2ec   : > { %1772 = vxpose.xlu1.b32.start.end [1/1] (short) (narrow) %v1770_v50, 8 }
 0x2f0   : > { %1840 = vxpose.xlu1.b32.start.end [1/1] (short) (narrow) %v1838_v52, 8 }
 0x2f1   : > { %v2380_v54 = vpop.eup %2379 }
 0x2f2   : > { %v1017_v55 = vmul.f32 0.6931472, %v2380_v54 }
 0x2f4   : > { %v1023_v59 = vsel %vm1022_vm9, %v1020_v56, %v1017_v55 }
 0x2f5   : > { %v1024_v60 = vadd.f32 %v1023_v59, %v1010_v58 }
 0x2f7   : > { %1186 = vst.msk [vmem:[#allocation2] sm:$0xff] %vm850_vm6, %v1024_v60  ;;  %v1187_v61 = vmul.f32 %v1024_v60, %v2722_v57 }
 0x2f9   : > { %1188 = vst.msk [vmem:[#allocation3] sm:$0xff] %vm850_vm6, %v1187_v61 }
 0x2fe   : > { %v1190_v63 = vld [vmem:[#allocation2] sm:$0xff] }
 0x2ff   : > { %v1197_v0 = vrot.slane %v1190_v63, %v2698_v24  ;;  %v1204_v1 = vrot.slane %v1190_v63, %v2701_v26  ;;  %v1211_v4 = vrot.slane %v1190_v63, %v2708_v31  ;;  %v1218_v11 = vrot.slane %v1190_v63, %v2689_v21 }
 0x300   : > { %v1225_v15 = vrot.slane %v1190_v63, %v1224_v7  ;;  %v2771_v16 = vld [vmem:[#allocation3] sm:$0xff]  ;;  %v1232_v19 = vrot.slane %v1190_v63, %v1231_v12  ;;  %v1239_v35 = vrot.slane %v1190_v63, %v1238_v17  ;;  %v1246_v43 = vrot.slane %v1190_v63, %v1245_v32 }
 0x301   : > { %v1198_v2 = vmul.f32 %v1197_v0, %v1189_v62  ;;  %v1205_v3 = vmul.f32 %v1204_v1, %v1189_v62  ;;  %v1212_v10 = vmul.f32 %v1211_v4, %v1189_v62  ;;  %v1219_v13 = vmul.f32 %v1218_v11, %v1189_v62 }
 0x302   : > { %v1226_v23 = vmul.f32 %v1225_v15, %v1189_v62  ;;  %v1290_v25 = vrot.slane %v2771_v16, %v2698_v24  ;;  %v1233_v33 = vmul.f32 %v1232_v19, %v1189_v62  ;;  %v1335_v37 = vrot.slane %v2771_v16, %v2701_v26 }
 0x303   : > { %v1199_v5 = vmul.f32 1.442695, %v1198_v2  ;;  %v1206_v9 = vmul.f32 1.442695, %v1205_v3  ;;  %v1213_v6 = vmul.f32 1.442695, %v1212_v10  ;;  %v1240_v42 = vmul.f32 %v1239_v35, %v1189_v62 }
 0x304   : > { %v1220_v22 = vmul.f32 1.442695, %v1219_v13  ;;  %v1227_v34 = vmul.f32 1.442695, %v1226_v23  ;;  %v1234_v41 = vmul.f32 1.442695, %v1233_v33  ;;  %v1379_v20 = vrot.slane %v2771_v16, %v2708_v31 }
 0x305   : > { %2381 = vpow2.f32 %v1199_v5  ;;  %v1241_v26 = vmul.f32 1.442695, %v1240_v42  ;;  %v1247_v49 = vmul.f32 %v1246_v43, %v1189_v62  ;;  %v1423_v51 = vrot.slane %v2771_v16, %v2689_v21 }
 0x306   : > { %2383 = vpow2.f32 %v1206_v9  ;;  %v1467_v58 = vrot.slane %v2771_v16, %v1224_v7  ;;  %v1511_v63 = vrot.slane %v2771_v16, %v1231_v12  ;;  %v1555_v4 = vrot.slane %v2771_v16, %v1238_v17 }
 0x307   : > { %2385 = vpow2.f32 %v1213_v6  ;;  %v1248_v31 = vmul.f32 1.442695, %v1247_v49  ;;  %v1599_v6 = vrot.slane %v2771_v16, %v1245_v32  ;;  %v2024_v32 = vld [vmem:[%s2911_s15 + $0x8] sm:$0xff] }
 0x308   : > { %2387 = vpow2.f32 %v1220_v22 }
 0x309   : > { %2389 = vpow2.f32 %v1227_v34  ;;  %v2205_v34 = vld [vmem:[%s2944_s27] ss:$0 sm:$0xff]  ;;  %s2138_s27 = sshll.u32 %s620_s21, 4  ;;  %s2855_s27 = int_to_ptr.vmem [resolvable:$true] %s2138_s27 }
 0x30a   : > { %v1285_v18 = vpop.permute.xlu0 %1284  ;;  %2391 = vpow2.f32 %v1234_v41  ;;  %v2814_v35 = vadd.f32 %v2205_v34, %v2750_v14  ;;  %s2403_s23 = scalar_lea.vmem %s2855_s27, 128  ;;  %p2410_p0 = scmp.lt.s32.totalorder %s2855_s27, %s2408_s0 }
 0x30b   : > { %v1291_v30 = vmul.f32 %v1290_v25, %v1285_v18  ;;  %2393 = vpow2.f32 %v1241_v26  ;;  %p2404_p11 = scmp.ne.s32.totalorder %s2855_s27, %s2403_s23  ;;  %p2411_p1 = scmp.lt.s32.totalorder %s2409_s25, %s2403_s23 }
 0x30c   : > { %2395 = vpow2.f32 %v1248_v31 }
 0x30d   : > { %p2405_p12 = pnand %p2404_p11, %p2615_p5  ;;  %p2412_p2 = por %p2411_p1, %p2410_p0 }
 0x30e   : > { %v1330_v27 = vpop.permute.xlu1 %1329 }
 0x30f   : > { %v2382_v28 = vpop.eup %2381  ;;  %v1336_v40 = vmul.f32 %v1335_v37, %v1330_v27  ;;  %p2406_p13 = pneg %p2405_p12 }
 0x310   : > { %v1872_v29 = vmul.f32 0.0, %v2382_v28  ;;  %v2384_v39 = vpop.eup %2383 }
 0x311   : > { %v2386_v45 = vpop.eup %2385  ;;  %p2413_p3 = pnand %p2412_p2, %p2406_p13 }
 0x312   : > { %v2777_v36 = vadd.f32 %v1872_v29, %v1291_v30  ;;  %v1374_v38 = vpop.permute.xlu1 %1373  ;;  %v2388_v52 = vpop.eup %2387  ;;  %v2023_v30 = vld [vmem:[%s2911_s15] sm:$0xff] }
 0x313   : > { %v1380_v47 = vmul.f32 %v1379_v20, %v1374_v38  ;;  %v2390_v59 = vpop.eup %2389  ;;  %v2326_v33 = vpack.c.bf16 %v2024_v32, %v2023_v30 }
 0x314   : > { %v1887_v24 = vmul.f32 %v2384_v39, %v2777_v36  ;;  %v1506_v62 = vpop.permute.xlu0 %1505  ;;  %v2392_v0 = vpop.eup %2391 }
 0x315   : > { %v1512_v2 = vmul.f32 %v1511_v63, %v1506_v62  ;;  %v2394_v9 = vpop.eup %2393  ;;  %2327 = vmatpush3.bf16.msra.mxu0 %v2326_v33 }
 0x316   : > { %v2782_v44 = vadd.f32 %v1887_v24, %v1336_v40  ;;  %v1418_v46 = vpop.permute.xlu1 %1417  ;;  %v2396_v15 = vpop.eup %2395  ;;  %v2016_v40 = vsub.f32 0.0, %v2814_v35 }
 0x317   : > { %v1424_v53 = vmul.f32 %v1423_v51, %v1418_v46 }
 0x318   : > { %v1902_v48 = vmul.f32 %v2386_v45, %v2782_v44 }
 0x31a   : > { %v2787_v50 = vadd.f32 %v1902_v48, %v1380_v47  ;;  %v1462_v55 = vpop.permute.xlu1 %1461  ;;  %v2017_v48 = vmul.f32 1.442695, %v2016_v40 }
 0x31b   : > { %v1468_v60 = vmul.f32 %v1467_v58, %v1462_v55 }
 0x31c   : > { %v1917_v54 = vmul.f32 %v2388_v52, %v2787_v50  ;;  %2397 = vpow2.f32 %v2017_v48 }
 0x31e   : > { %v2792_v56 = vadd.f32 %v1917_v54, %v1424_v53  ;;  %v1550_v1 = vpop.permute.xlu1 %1549 }
 0x31f   : > { %v1556_v10 = vmul.f32 %v1555_v4, %v1550_v1 }
 0x320   : > { %v1932_v61 = vmul.f32 %v2390_v59, %v2792_v56 }
 0x322   : > { %v1933_v21 = vadd.f32 %v1932_v61, %v1468_v60  ;;  %v1594_v11 = vpop.permute.xlu1 %1593 }
 0x323   : > { %v1600_v18 = vmul.f32 %v1599_v6, %v1594_v11 }
 0x324   : > { %v1947_v3 = vmul.f32 %v2392_v0, %v1933_v21 }
 0x326   : > { %v2798_v5 = vadd.f32 %v1947_v3, %v1512_v2 }
 0x328   : > { %v1962_v7 = vmul.f32 %v2394_v9, %v2798_v5 }
 0x32a   : > { %v1963_v13 = vadd.f32 %v1962_v7, %v1556_v10 }
 0x32c   : > { %v1977_v12 = vmul.f32 %v2396_v15, %v1963_v13 }
 0x32e   : > { %v2802_v19 = vadd.f32 %v1977_v12, %v1600_v18 }
 0x360   : > { %v1617_v22 = vpop.trf.xlu1 }
 0x361   : > { %1876 = vperm.xlu0 %2371, %v1617_v22  }
 0x362   : > { %v1652_v23 = vpop.trf.xlu0 }
 0x363   : > { %1891 = vperm.xlu1 %2372, %v1652_v23  }
 0x364   : > { %v1686_v17 = vpop.trf.xlu1 }
 0x365   : > { %1906 = vperm.xlu0 %2371, %v1686_v17  }
 0x366   : > { %v1754_v25 = vpop.trf.xlu0 }
 0x367   : > { %1936 = vperm.xlu1 %2372, %v1754_v25  }
 0x368   : > { %v1720_v27 = vpop.trf.xlu1 }
 0x369   : > { %1921 = vperm.xlu0 %2371, %v1720_v27  }
 0x36a   : > { %v1822_v28 = vpop.trf.xlu0 }
 0x36b   : > { %1966 = vperm.xlu1 %2372, %v1822_v28  }
 0x36c   : > { %v1788_v29 = vpop.trf.xlu1 }
 0x36d   : > { %1951 = vperm.xlu0 %2371, %v1788_v29  }
 0x370   : > { %v1856_v16 = vpop.trf.xlu1 }
 0x371   : > { %1981 = vperm.xlu0 %2371, %v1856_v16  }
 0x3e0   : > { %v1877_v37 = vpop.permute.xlu0 %1876 }
 0x3e1   : > { %v1879_v38 = vmul.f32 %v1877_v37, %v2777_v36 }
 0x3e2   : > { %v1892_v39 = vpop.permute.xlu1 %1891 }
 0x3e3   : > { %v1880_v24 = vsel %vm850_vm6, %v1879_v38, 0.0  ;;  %v1894_v41 = vmul.f32 %v1892_v39, %v2782_v44  ;;  %v2398_v39 = vpop.eup %2397 }
 0x3e4   : > { %v1881_v42 = vrot.slane %v1880_v24, 4  ;;  %v1907_v43 = vpop.permute.xlu0 %1906 }
 0x3e5   : > { %v1895_v20 = vsel %vm850_vm6, %v1894_v41, 0.0  ;;  %v1909_v45 = vmul.f32 %v1907_v43, %v2787_v50 }
 0x3e6   : > { %v1882_v46 = vadd.f32 %v1881_v42, %v1880_v24  ;;  %v1896_v47 = vrot.slane %v1895_v20, 4  ;;  %v1937_v14 = vpop.permute.xlu1 %1936 }
 0x3e7   : > { %v1910_v26 = vsel %vm850_vm6, %v1909_v45, 0.0  ;;  %v1939_v36 = vmul.f32 %v1937_v14, %v1933_v21 }
 0x3e8   : > { %v1883_v49 = vrot.slane %v1882_v46, 2  ;;  %v1897_v51 = vadd.f32 %v1896_v47, %v1895_v20  ;;  %v1911_v52 = vrot.slane %v1910_v26, 4  ;;  %v1922_v53 = vpop.permute.xlu0 %1921  ;;  %v2019_v20 = vadd.f32 1.0, %v2398_v39 }
 0x3e9   : > { %v1940_v54 = vsel %vm850_vm6, %v1939_v36, 0.0  ;;  %v1924_v44 = vmul.f32 %v1922_v53, %v2792_v56 }
 0x3ea   : > { %v1884_v55 = vadd.f32 %v1883_v49, %v1882_v46  ;;  %v1898_v31 = vrot.slane %v1897_v51, 2  ;;  %v1912_v58 = vadd.f32 %v1911_v52, %v1910_v26  ;;  %v1941_v59 = vrot.slane %v1940_v54, 4  ;;  %v1967_v50 = vpop.permute.xlu1 %1966 }
 0x3eb   : > { %v1925_v60 = vsel %vm850_vm6, %v1924_v44, 0.0  ;;  %v1969_v61 = vmul.f32 %v1967_v50, %v1963_v13  ;;  %2399 = vrcp.f32 %v2019_v20 }
 0x3ec   : > { %v1885_v62 = vrot.slane %v1884_v55, 1  ;;  %v1899_v63 = vadd.f32 %v1898_v31, %v1897_v51  ;;  %v1913_v21 = vrot.slane %v1912_v58, 2  ;;  %v1942_v0 = vadd.f32 %v1941_v59, %v1940_v54  ;;  %v1952_v1 = vpop.permute.xlu0 %1951 }
 0x3ed   : > { %v1926_v2 = vrot.slane %v1925_v60, 4  ;;  %v1970_v3 = vsel %vm850_vm6, %v1969_v61, 0.0  ;;  %v1954_v4 = vmul.f32 %v1952_v1, %v2798_v5 }
 0x3ee   : > { %v1900_v56 = vrot.slane %v1899_v63, 1  ;;  %v1914_v9 = vadd.f32 %v1913_v21, %v1912_v58  ;;  %v1943_v10 = vrot.slane %v1942_v0, 2  ;;  %v1886_v7 = vadd.f32 %v1885_v62, %v1884_v55  ;;  %v2217_v55 = vld [vmem:[%s2914_s18] ss:$0 sm:$0xff] }
 0x3ef   : > { %v1927_v11 = vadd.f32 %v1926_v2, %v1925_v60  ;;  %v1971_v6 = vrot.slane %v1970_v3, 4  ;;  %v1955_v15 = vsel %vm850_vm6, %v1954_v4, 0.0  ;;  %v2014_v58 = vmul.f32 %v2217_v55, %v2722_v57  ;;  %v2218_v62 = vld [vmem:[%s2912_s16] ss:$0 sm:$0xff] }
 0x3f0   : > { %v1901_v13 = vadd.f32 %v1900_v56, %v1899_v63  ;;  %v1915_v18 = vrot.slane %v1914_v9, 1  ;;  %v1944_v12 = vadd.f32 %v1943_v10, %v1942_v0  ;;  %v1956_v22 = vrot.slane %v1955_v15, 4  ;;  %v1982_v23 = vpop.permute.xlu0 %1981  ;;  %v2220_v56 = vld [vmem:[%s2915_s19] ss:$0 sm:$0xff] }
 0x3f1   : > { %v1928_v17 = vrot.slane %v1927_v11, 2  ;;  %v1972_v25 = vadd.f32 %v1971_v6, %v1970_v3  ;;  %v1984_v27 = vmul.f32 %v1982_v23, %v2802_v19 }
 0x3f2   : > { %v1993_v5 = vsel %vm1992_vm10, %v1886_v7, %v1901_v13  ;;  %v1916_v28 = vadd.f32 %v1915_v18, %v1914_v9  ;;  %v1957_v29 = vadd.f32 %v1956_v22, %v1955_v15  ;;  %v1945_v34 = vrot.slane %v1944_v12, 1 }
 0x3f3   : > { %v1929_v16 = vadd.f32 %v1928_v17, %v1927_v11  ;;  %v1973_v30 = vrot.slane %v1972_v25, 2  ;;  %v1985_v32 = vsel %vm850_vm6, %v1984_v27, 0.0 }
 0x3f4   : > { %v1995_v33 = vsel %vm1994_vm11, %v1993_v5, %v1916_v28  ;;  %v1958_v37 = vrot.slane %v1957_v29, 2  ;;  %v1986_v38 = vrot.slane %v1985_v32, 4  ;;  %v1946_v45 = vadd.f32 %v1945_v34, %v1944_v12 }
 0x3f5   : > { %v1930_v40 = vrot.slane %v1929_v16, 1  ;;  %v1974_v24 = vadd.f32 %v1973_v30, %v1972_v25  ;;  %v2400_v31 = vpop.eup %2399 }
 0x3f6   : > { %v1959_v41 = vadd.f32 %v1958_v37, %v1957_v29  ;;  %v1987_v42 = vadd.f32 %v1986_v38, %v1985_v32  ;;  %v2021_v50 = vmul.f32 %v2400_v31, %v2814_v35 }
 0x3f7   : > { %v1931_v43 = vadd.f32 %v1930_v40, %v1929_v16  ;;  %v1975_v19 = vrot.slane %v1974_v24, 1 }
 0x3f8   : > { %v1960_v46 = vrot.slane %v1959_v41, 1  ;;  %v1988_v47 = vrot.slane %v1987_v42, 2 }
 0x3f9   : > { %v1997_v14 = vsel %vm1996_vm12, %v1995_v33, %v1931_v43  ;;  %v1976_v49 = vadd.f32 %v1975_v19, %v1974_v24 }
 0x3fa   : > { %v1998_v48 = vsel %vm936_vm2, %v1997_v14, %v1946_v45  ;;  %v1961_v26 = vadd.f32 %v1960_v46, %v1959_v41  ;;  %v1989_v36 = vadd.f32 %v1988_v47, %v1987_v42 }
 0x3fc   : > { %v2000_v51 = vsel %vm1999_vm13, %v1998_v48, %v1961_v26  ;;  %v1990_v52 = vrot.slane %v1989_v36, 1 }
 0x3fd   : > { %v2002_v53 = vsel %vm2001_vm14, %v2000_v51, %v1976_v49 }
 0x3fe   : > { %v1991_v54 = vadd.f32 %v1990_v52, %v1989_v36 }
 0x400   : > { %v2004_v44 = vsel %vm2003_vm15, %v2002_v53, %v1991_v54 }
 0x401   : > { %2005 = vst.msk [vmem:[#allocation2] sm:$0xff] %vm850_vm6, %v2004_v44 }
 0x408   : > { %v2006_v59 = vld [vmem:[#allocation2] sm:$0xff] }
 0x409   : > { %v2015_v60 = vadd.f32 %v2014_v58, %v2006_v59 }
 0x40b   : > { %v2022_v61 = vmul.f32 %v2021_v50, %v2015_v60 }
 0x40d   : > { %2302 = vmatmul.mubr.msk.f32.vlgmr.msra.gmra.mrb[6].mxu0 %vm850_vm6, %v2022_v61 }
 0x4e0   : > { %v2101_v63 = vpop.f32.mrb[6].mxu0 }
 0x4e1   : > { %v2102_v21 = vadd.f32 %v2218_v62, %v2101_v63  ;;  %v2303_v0 = vpop.f32.mrb[7].mxu0 }
 0x4e3   : > { %v2105_v1 = vmul.f32 %v2102_v21, %v2102_v21 }
 0x4e5   : > { %v2106_v2 = vsel %vm637_vm1, %v2105_v1, 0.0 }
 0x4e6   : > { %2107 = vadd.xlane.f32.xlu1 %v2106_v2 }
 0x573   : > { %v2108_v57 = vpop.xlane.xlu1 %2107 }
 0x574   : > { %v2110_v3 = vmul.f32 0.03125, %v2108_v57 }
 0x576   : > { %v2111_v4 = vadd.f32 1e-15, %v2110_v3 }
 0x578   : > { %2401 = vrsqrt.f32 %v2111_v4 }
 0x582   : > { %v2402_v35 = vpop.eup %2401 }
 0x583   : > { %v2113_v9 = vmul.f32 %v2402_v35, %v2102_v21 }
 0x585   : > { %v2121_v10 = vmul.f32 %v2220_v56, %v2113_v9 }
 0x587   : > { %v2122_v7 = vadd.f32 %v2121_v10, %v2649_v8 }
 0x589   : > { %2123 = vst.msk [vmem:[%s620_s21] sm:$0xff] %vm637_vm1, %v2122_v7 }
 0x58a   : > { %2416 = shalt.err (!%p2413_p3)
}
 0x58b   : > { %s2417_s30 = scalar_lea.hbm %s2853_s24, 128  ;;  %s2421_s28 = scalar_lea.hbm %s2916_s20, 256 }
 0x58c   : > { %p2418_p4 = scmp.ne.s32.totalorder %s2853_s24, %s2417_s30  ;;  %p2422_p9 = scmp.lt.u32.totalorder %s2853_s24, %s2916_s20 }
 0x58d   : > { %p2423_p10 = scmp.lt.u32.totalorder %s2421_s28, %s2417_s30  ;;  %p2425_p12 = scmp.lt.u32.totalorder %s2417_s30, %s2853_s24 }
 0x58e   : > { %p2419_p7 = pnand %p2418_p4, %p2615_p5 }
 0x58f   : > { %p2424_p11 = por %p2423_p10, %p2422_p9 }
 0x590   : > { %p2420_p8 = pneg %p2419_p7 }
 0x591   : > { %p2426_p13 = por %p2425_p12, %p2424_p11 }
 0x593   : > { %p2427_p0 = pnand %p2426_p13, %p2420_p8 }
 0x595   : > { %2430 = shalt.err (!%p2427_p0)
}
 0x596   : > { %2328 = dma.vmem_to_hbm [thread:$0]  (%p2615_p5), %s2855_s27, 128, %s2853_s24, %s2125_s29  }
 0x597 PF: > { %s2945_s23 = sld [smem:[#allocation11_spill]]  ;;  %s2946_s0 = sld [smem:[#allocation9_spill]] }
 0x59d   : > { %p2334_p1 = scmp.ge.s32.totalorder %s2945_s23, 2  ;;  %s2150_s26 = sand.u32 1, %s2946_s0  }
 0x59e   : > { %s2151_s21 = scalar_lea.sflag [#allocation7], %s2150_s26 }
 0x59f   : > { %p2331_p2 = pnand %p2334_p1, %p2619_p6 }
 0x5a1   : > { %2448 = dma.done.wait (!%p2331_p2), %s2151_s21, 128  }
 0x5a2   : > { %2450 = vsyncadd (!%p2331_p2), %s2151_s21, 4294967168  ;;  %s2948_s24 = sld [smem:[#allocation12_spill]]  ;;  %s2949_s30 = sld [smem:[#allocation10_spill]] }
 0x5a3   : > { %s2950_s23 = sld [smem:[#allocation13_spill]]  ;;  %s2951_s1 = smov %s2457_s22 }
 0x5a8   : > { %p30_p3 = scmp.ge.s32.totalorder %s2948_s24, 4   ;;  %s2952_s22 = smov %s2949_s30 }
 0x5aa   :  { %32 = sbr.rel (!%p30_p3) target bundleno = 9 (0x9), region = 135 }
 0x5b1   :  { %2156 = vsyncpa [#allocation7], 1 }
 0x5b2   :  { %2158 = vsyncpa [#allocation7 + $0x1], 1 }

</bundles_post_ra>
